<compile_context>
chip_gen: v5e
topology: v5e:2x2
jax: 0.10.0
libtpu: 0.0.40
codegen_flags: <defaults>
</compile_context>

<pallas_src>
import numpy as np
import jax
import jax.numpy as jnp
from jax.experimental import pallas as pl
from jax.experimental.pallas import tpu as pltpu

# ----------------------------- problem sizes --------------------------------
N, CIN, H, W = 2, 1, 16, 16         # input (small MNIST-like image), C_in == 1
OC, KH, KW = 20, 5, 5               # conv1: Conv2d(1, 20, 5, stride=1), VALID
OH, OW = H - KH + 1, W - KW + 1     # 12, 12
PH, PW = OH // 2, OW // 2           # 6, 6   (max_pool2d(2, 2))
OCP = 128                           # lane-padded output channels (20 -> 128)
RSEL_ROWS = KH * 2 * N * PH         # 120: gathered-row index (kh, di, n, ph)
EROWS = 2 * N * PH                  # 24:  conv rows per kh block (di, n, ph)
ECOLS = 2 * PW * OCP                # 1536: conv cols (dj, pw, oc)


# ------------------------------- Pallas kernel ------------------------------
def conv_relu_pool_kernel(x_ref, rsel_ref, dsel_ref, b_ref, o_ref):
    """x_ref:    (N*H, W)            images, row n*H + h
       rsel_ref: (RSEL_ROWS, N*H)    one-hot row-selection (kh, di, n, ph)
       dsel_ref: (KH, W, ECOLS)      weighted column selection (conv weights folded in)
       b_ref:    (1, PW*OCP)         bias tiled over pw, zero-padded beyond OC
       o_ref:    (N*PH, PW*OCP)      pooled output, lane-dense."""
    # In-kernel "im2col" row gather on the MXU:
    #   a[(kh, di, n, ph), w] = x[n, 2*ph + di + kh, w]
    a = jnp.dot(rsel_ref[...], x_ref[...], preferred_element_type=jnp.float32)

    # Conv contraction over (kh, kw): one MXU push per kh, accumulate in f32.
    #   e[(di, n, ph), (dj, pw, oc)] = conv output at (n, 2ph+di, 2pw+dj, oc)
    e = jnp.dot(a[0:EROWS, :], dsel_ref[0], preferred_element_type=jnp.float32)
    for kh in range(1, KH):
        e = e + jnp.dot(a[kh * EROWS:(kh + 1) * EROWS, :], dsel_ref[kh],
                        preferred_element_type=jnp.float32)

    # 2x2 max-pool: di lives in the two row halves, dj in the two 768-lane halves.
    half_r = N * PH            # 12
    half_c = PW * OCP          # 768 (128-aligned lane split)
    m = jnp.maximum(e[:half_r, :], e[half_r:, :])
    m = jnp.maximum(m[:, :half_c], m[:, half_c:])

    # Shared bias + ReLU applied once after the max (bias shared; ReLU/max commute).
    o_ref[...] = jnp.maximum(m + b_ref[...], 0.0)


# ------------------------- one-time parameter prep ---------------------------
def net1_prepare(w, b):
    """Build the constant operands once at init (hoisted out of the hot path).

    rsel:  one-hot row gather,   rsel[((kh*2+di)*N+n)*PH+ph, n*H + 2*ph+di+kh] = 1
    dsel:  weighted col gather,  dsel[kh, dj+2*pw+kw, (dj*PW+pw)*OCP + oc] = w[oc,kh,kw]
    biasT: bias tiled over pw,   biasT[0, pw*OCP + oc] = b[oc]  (zero beyond OC)
    """
    w_np = np.asarray(w, np.float32).reshape(OC, KH, KW)
    b_np = np.asarray(b, np.float32)

    rsel = np.zeros((RSEL_ROWS, N * H), np.float32)
    r = 0
    for kh in range(KH):
        for di in range(2):
            for n in range(N):
                for ph in range(PH):
                    rsel[r, n * H + 2 * ph + di + kh] = 1.0
                    r += 1

    dsel = np.zeros((KH, W, ECOLS), np.float32)
    for kh in range(KH):
        for dj in range(2):
            for pw in range(PW):
                base = (dj * PW + pw) * OCP
                for kw in range(KW):
                    wcol = dj + 2 * pw + kw
                    dsel[kh, wcol, base:base + OC] = w_np[:, kh, kw]

    bias_t = np.zeros((1, PW * OCP), np.float32)
    for pw in range(PW):
        bias_t[0, pw * OCP:pw * OCP + OC] = b_np

    return jnp.asarray(rsel), jnp.asarray(dsel), jnp.asarray(bias_t)


# --------------------------------- forward -----------------------------------
@jax.jit
def net1_forward(x, rsel, dsel, bias_t):
    """x: (N, 1, H, W) NCHW float32. Returns (N, OC, PH, PW) NCHW float32."""
    xs = x.reshape(N * H, W)  # C_in == 1; pure metadata reshape (no copy)

    o = pl.pallas_call(
        conv_relu_pool_kernel,
        out_shape=jax.ShapeDtypeStruct((N * PH, PW * OCP), jnp.float32),
        grid=(1,),
        in_specs=[
            pl.BlockSpec((N * H, W), lambda i: (0, 0)),
            pl.BlockSpec((RSEL_ROWS, N * H), lambda i: (0, 0)),
            pl.BlockSpec((KH, W, ECOLS), lambda i: (0, 0, 0)),
            pl.BlockSpec((1, PW * OCP), lambda i: (0, 0)),
        ],
        out_specs=pl.BlockSpec((N * PH, PW * OCP), lambda i: (0, 0)),
        compiler_params=pltpu.CompilerParams(
            dimension_semantics=("arbitrary",)),
    )(xs, rsel, dsel, bias_t)

    # Epilogue kept (PyTorch Net1 returns NCHW): slice real channels + transpose.
    return o.reshape(N, PH, PW, OCP)[..., :OC].transpose(0, 3, 1, 2)


# -------------------------------- reference ----------------------------------
def net1_reference(x, w, b):
    """Plain-JAX reference (conv -> relu -> maxpool), NCHW."""
    y = jax.lax.conv_general_dilated(
        x, w, window_strides=(1, 1), padding="VALID",
        dimension_numbers=("NCHW", "OIHW", "NCHW"))
    y = jnp.maximum(y + b.reshape(1, OC, 1, 1), 0.0)
    return jax.lax.reduce_window(
        y, -jnp.inf, jax.lax.max, (1, 1, 2, 2), (1, 1, 2, 2), "VALID")


if __name__ == "__main__":
    key = jax.random.PRNGKey(0)
    k_w, k_b, k_x = jax.random.split(key, 3)

    # Deterministic parameter init (PyTorch-style uniform bounds, synthetic).
    fan_in = CIN * KH * KW
    bound = 1.0 / (fan_in ** 0.5)
    w = jax.random.uniform(k_w, (OC, CIN, KH, KW), jnp.float32, -bound, bound)
    b = jax.random.uniform(k_b, (OC,), jnp.float32, -bound, bound)
    x = jax.random.normal(k_x, (N, CIN, H, W), jnp.float32)

    # One-time parameter prep (not in the per-call path).
    rsel, dsel, bias_t = net1_prepare(w, b)

    out = jax.block_until_ready(net1_forward(x, rsel, dsel, bias_t))
    ref = jax.block_until_ready(net1_reference(x, w, b))

    assert out.shape == (N, OC, PH, PW), out.shape
    assert jnp.allclose(out, ref, atol=1e-4, rtol=1e-4), "mismatch vs reference"
    print("KERNEL_OK")
</pallas_src>

<mosaic_0001>
module attributes {stable_mosaic.version = 11 : i64} {
  func.func @conv_relu_pool_kernel(%arg0: i32, %arg1: memref<32x16xf32, #tpu.memory_space<vmem>>, %arg2: memref<120x32xf32, #tpu.memory_space<vmem>>, %arg3: memref<5x16x1536xf32, #tpu.memory_space<vmem>>, %arg4: memref<1x768xf32, #tpu.memory_space<vmem>>, %arg5: memref<12x768xf32, #tpu.memory_space<vmem>>) attributes {dimension_semantics = [#tpu.dimension_semantics<arbitrary>], iteration_bounds = array<i64: 1>, scalar_prefetch = 0 : i64, scratch_operands = 0 : i64, tpu.core_type = #tpu.core_type<tc>, window_params = [{pipeline_mode = #tpu.pipeline_mode<synchronous>, transform_indices = @transform_0, window_bounds = array<i64: 32, 16>}, {pipeline_mode = #tpu.pipeline_mode<synchronous>, transform_indices = @transform_1, window_bounds = array<i64: 120, 32>}, {pipeline_mode = #tpu.pipeline_mode<synchronous>, transform_indices = @transform_2, window_bounds = array<i64: 5, 16, 1536>}, {pipeline_mode = #tpu.pipeline_mode<synchronous>, transform_indices = @transform_3, window_bounds = array<i64: 1, 768>}, {pipeline_mode = #tpu.pipeline_mode<synchronous>, transform_indices = @transform_4, window_bounds = array<i64: 12, 768>}]} {
    %c0 = arith.constant 0 : index
    %c0_0 = arith.constant 0 : index
    %0 = vector.load %arg2[%c0, %c0_0] : memref<120x32xf32, #tpu.memory_space<vmem>>, vector<120x32xf32>
    %c0_1 = arith.constant 0 : index
    %c0_2 = arith.constant 0 : index
    %1 = vector.load %arg1[%c0_1, %c0_2] : memref<32x16xf32, #tpu.memory_space<vmem>>, vector<32x16xf32>
    %cst = arith.constant dense<0.000000e+00> : vector<120x16xf32>
    %2 = tpu.matmul %0, %1, %cst {dimension_numbers = #tpu.dot_dimension_numbers<[1], [0], [0], [1], [0, 0, 1, 1], [], []>} : vector<120x32xf32>, vector<32x16xf32>, vector<120x16xf32> -> vector<120x16xf32>
    %3 = vector.extract_strided_slice %2 {offsets = [0, 0], sizes = [24, 16], strides = [1, 1]} : vector<120x16xf32> to vector<24x16xf32>
    %c0_3 = arith.constant 0 : index
    %c0_4 = arith.constant 0 : index
    %c0_5 = arith.constant 0 : index
    %4 = vector.load %arg3[%c0_3, %c0_4, %c0_5] : memref<5x16x1536xf32, #tpu.memory_space<vmem>>, vector<1x16x1536xf32>
    %5 = vector.shape_cast %4 : vector<1x16x1536xf32> to vector<16x1536xf32>
    %cst_6 = arith.constant dense<0.000000e+00> : vector<24x1536xf32>
    %6 = tpu.matmul %3, %5, %cst_6 {dimension_numbers = #tpu.dot_dimension_numbers<[1], [0], [0], [1], [0, 0, 1, 1], [], []>} : vector<24x16xf32>, vector<16x1536xf32>, vector<24x1536xf32> -> vector<24x1536xf32>
    %7 = vector.extract_strided_slice %2 {offsets = [24, 0], sizes = [24, 16], strides = [1, 1]} : vector<120x16xf32> to vector<24x16xf32>
    %c1 = arith.constant 1 : index
    %c0_7 = arith.constant 0 : index
    %c0_8 = arith.constant 0 : index
    %8 = vector.load %arg3[%c1, %c0_7, %c0_8] : memref<5x16x1536xf32, #tpu.memory_space<vmem>>, vector<1x16x1536xf32>
    %9 = vector.shape_cast %8 : vector<1x16x1536xf32> to vector<16x1536xf32>
    %cst_9 = arith.constant dense<0.000000e+00> : vector<24x1536xf32>
    %10 = tpu.matmul %7, %9, %cst_9 {dimension_numbers = #tpu.dot_dimension_numbers<[1], [0], [0], [1], [0, 0, 1, 1], [], []>} : vector<24x16xf32>, vector<16x1536xf32>, vector<24x1536xf32> -> vector<24x1536xf32>
    %11 = arith.addf %6, %10 : vector<24x1536xf32>
    %12 = vector.extract_strided_slice %2 {offsets = [48, 0], sizes = [24, 16], strides = [1, 1]} : vector<120x16xf32> to vector<24x16xf32>
    %c2 = arith.constant 2 : index
    %c0_10 = arith.constant 0 : index
    %c0_11 = arith.constant 0 : index
    %13 = vector.load %arg3[%c2, %c0_10, %c0_11] : memref<5x16x1536xf32, #tpu.memory_space<vmem>>, vector<1x16x1536xf32>
    %14 = vector.shape_cast %13 : vector<1x16x1536xf32> to vector<16x1536xf32>
    %cst_12 = arith.constant dense<0.000000e+00> : vector<24x1536xf32>
    %15 = tpu.matmul %12, %14, %cst_12 {dimension_numbers = #tpu.dot_dimension_numbers<[1], [0], [0], [1], [0, 0, 1, 1], [], []>} : vector<24x16xf32>, vector<16x1536xf32>, vector<24x1536xf32> -> vector<24x1536xf32>
    %16 = arith.addf %11, %15 : vector<24x1536xf32>
    %17 = vector.extract_strided_slice %2 {offsets = [72, 0], sizes = [24, 16], strides = [1, 1]} : vector<120x16xf32> to vector<24x16xf32>
    %c3 = arith.constant 3 : index
    %c0_13 = arith.constant 0 : index
    %c0_14 = arith.constant 0 : index
    %18 = vector.load %arg3[%c3, %c0_13, %c0_14] : memref<5x16x1536xf32, #tpu.memory_space<vmem>>, vector<1x16x1536xf32>
    %19 = vector.shape_cast %18 : vector<1x16x1536xf32> to vector<16x1536xf32>
    %cst_15 = arith.constant dense<0.000000e+00> : vector<24x1536xf32>
    %20 = tpu.matmul %17, %19, %cst_15 {dimension_numbers = #tpu.dot_dimension_numbers<[1], [0], [0], [1], [0, 0, 1, 1], [], []>} : vector<24x16xf32>, vector<16x1536xf32>, vector<24x1536xf32> -> vector<24x1536xf32>
    %21 = arith.addf %16, %20 : vector<24x1536xf32>
    %22 = vector.extract_strided_slice %2 {offsets = [96, 0], sizes = [24, 16], strides = [1, 1]} : vector<120x16xf32> to vector<24x16xf32>
    %c4 = arith.constant 4 : index
    %c0_16 = arith.constant 0 : index
    %c0_17 = arith.constant 0 : index
    %23 = vector.load %arg3[%c4, %c0_16, %c0_17] : memref<5x16x1536xf32, #tpu.memory_space<vmem>>, vector<1x16x1536xf32>
    %24 = vector.shape_cast %23 : vector<1x16x1536xf32> to vector<16x1536xf32>
    %cst_18 = arith.constant dense<0.000000e+00> : vector<24x1536xf32>
    %25 = tpu.matmul %22, %24, %cst_18 {dimension_numbers = #tpu.dot_dimension_numbers<[1], [0], [0], [1], [0, 0, 1, 1], [], []>} : vector<24x16xf32>, vector<16x1536xf32>, vector<24x1536xf32> -> vector<24x1536xf32>
    %26 = arith.addf %21, %25 : vector<24x1536xf32>
    %27 = vector.extract_strided_slice %26 {offsets = [0, 0], sizes = [12, 1536], strides = [1, 1]} : vector<24x1536xf32> to vector<12x1536xf32>
    %28 = vector.extract_strided_slice %26 {offsets = [12, 0], sizes = [12, 1536], strides = [1, 1]} : vector<24x1536xf32> to vector<12x1536xf32>
    %29 = arith.maximumf %27, %28 : vector<12x1536xf32>
    %30 = vector.extract_strided_slice %29 {offsets = [0, 0], sizes = [12, 768], strides = [1, 1]} : vector<12x1536xf32> to vector<12x768xf32>
    %31 = vector.extract_strided_slice %29 {offsets = [0, 768], sizes = [12, 768], strides = [1, 1]} : vector<12x1536xf32> to vector<12x768xf32>
    %32 = arith.maximumf %30, %31 : vector<12x768xf32>
    %c0_19 = arith.constant 0 : index
    %c0_20 = arith.constant 0 : index
    %33 = vector.load %arg4[%c0_19, %c0_20] : memref<1x768xf32, #tpu.memory_space<vmem>>, vector<1x768xf32>
    %34 = vector.broadcast %33 : vector<1x768xf32> to vector<12x768xf32>
    %35 = arith.addf %32, %34 : vector<12x768xf32>
    %cst_21 = arith.constant 0.000000e+00 : f32
    %36 = vector.broadcast %cst_21 : f32 to vector<12x768xf32>
    %37 = arith.maximumf %35, %36 : vector<12x768xf32>
    %c0_22 = arith.constant 0 : index
    %c0_23 = arith.constant 0 : index
    %38 = vector.load %arg5[%c0_22, %c0_23] : memref<12x768xf32, #tpu.memory_space<vmem>>, vector<12x768xf32>
    tpu.vector_store %arg5[%c0_22, %c0_23], %37 {strides = array<i32>} : memref<12x768xf32, #tpu.memory_space<vmem>>, vector<12x768xf32>,
    return
  }
  func.func @transform_0(%arg0: i32) -> (i32, i32) {
    %c0_i32 = arith.constant 0 : i32
    %c0_i32_0 = arith.constant 0 : i32
    %c0_i32_1 = arith.constant 0 : i32
    return %c0_i32, %c0_i32_0 : i32, i32
  }
  func.func @transform_1(%arg0: i32) -> (i32, i32) {
    %c0_i32 = arith.constant 0 : i32
    %c0_i32_0 = arith.constant 0 : i32
    %c0_i32_1 = arith.constant 0 : i32
    return %c0_i32, %c0_i32_0 : i32, i32
  }
  func.func @transform_2(%arg0: i32) -> (i32, i32, i32) {
    %c0_i32 = arith.constant 0 : i32
    %c0_i32_0 = arith.constant 0 : i32
    %c0_i32_1 = arith.constant 0 : i32
    %c0_i32_2 = arith.constant 0 : i32
    return %c0_i32, %c0_i32_0, %c0_i32_1 : i32, i32, i32
  }
  func.func @transform_3(%arg0: i32) -> (i32, i32) {
    %c0_i32 = arith.constant 0 : i32
    %c0_i32_0 = arith.constant 0 : i32
    %c0_i32_1 = arith.constant 0 : i32
    return %c0_i32, %c0_i32_0 : i32, i32
  }
  func.func @transform_4(%arg0: i32) -> (i32, i32) {
    %c0_i32 = arith.constant 0 : i32
    %c0_i32_0 = arith.constant 0 : i32
    %c0_i32_1 = arith.constant 0 : i32
    return %c0_i32, %c0_i32_0 : i32, i32
  }
}

</mosaic_0001>

<bundles_post_ra>
// kernel: net1_forward.1
= control target key start
LH: loop header
LB: loop body
LE: loop exit
PB: predicated region body
PF: predicated region fallthrough
CT: control target
= control target key end

     0   :  { %9 = vsyncpa [#allocation3], 0  ;;  %s2402_s18 = smov [#allocation2]   ;;  %s2403_s20 = smov 1536   ;;  %s3404_s0 = inlined_call_operand.vmem [shape: f32[32,16], index: 0, kind: input, shape index: {}]   ;;  %s3405_s1 = inlined_call_operand.vmem [shape: f32[120,32], index: 1, kind: input, shape index: {}]   ;;  %s3406_s2 = inlined_call_operand.hbm [shape: f32[5,16,1536], index: 2, kind: input, shape index: {}]   ;;  %s3407_s3 = inlined_call_operand.vmem [shape: f32[1,768], index: 3, kind: input, shape index: {}]   ;;  %s3408_s4 = inlined_call_operand.vmem [shape: f32[12,768], index: 4, kind: output, shape index: {}]  }
   0x1   :  { %s18_s17 = sshll.u32 %s3406_s2, 4  ;;  %s20_s19 = sshll.u32 %s2402_s18, 4  ;;  %s19_s17 = int_to_ptr.hbm [resolvable:$true] %s18_s17  ;;  %s21_s19 = int_to_ptr.vmem [resolvable:$true] %s20_s19 }
   0x2   :  { %s2404_s21 = smov 96  }
   0x3   :  { %26 = dma.hbm_to_vmem [thread:$0]  %s19_s17, 15360, %s21_s19, [#allocation3], %s2403_s20, %s2403_s20, %s2404_s21  }
   0x4   :  { %2400 = dma.done.wait [#allocation3], 15360  }
   0x5   :  { %2401 = vsyncadd [#allocation3], 4294951936  ;;  %v51_v0 = vld [vmem:[%s3404_s0 + $0x18] sm:$0xff]  ;;  %v50_v1 = vld [vmem:[%s3404_s0 + $0x10] sm:$0xff]  ;;  %vm52_vm0 = vcmask 261120   ;;  %vm209_vm1 = vcmask 130048  }
   0x6   :  { %110 = vmatpush.msra.mxu0 %v51_v0  ;;  %v49_v2 = vld [vmem:[%s3404_s0 + $0x8] sm:$0xff]  ;;  %v48_v3 = vld [vmem:[%s3404_s0] sm:$0xff]  ;;  %v35_v6 = vld [vmem:[%s3405_s1 + $0x10] sm:$0xff]  ;;  %vm2022_vm2 = vcmask 1043456  }
   0x7   :  { %v33_v4 = vld [vmem:[%s3405_s1] sm:$0xff]  ;;  %v34_v5 = vld [vmem:[%s3405_s1 + $0x8] sm:$0xff]  ;;  %v36_v7 = vld [vmem:[%s3405_s1 + $0x18] sm:$0xff] }
   0x8   :  { %111 = vmatpush.msra.mxu0 %v50_v1  ;;  %v37_v8 = vld [vmem:[%s3405_s1 + $0x20] sm:$0xff]  ;;  %v38_v9 = vld [vmem:[%s3405_s1 + $0x28] sm:$0xff]  ;;  %v39_v10 = vld [vmem:[%s3405_s1 + $0x30] sm:$0xff] }
   0x9   :  { %v40_v11 = vld [vmem:[%s3405_s1 + $0x38] sm:$0xff]  ;;  %v41_v12 = vld [vmem:[%s3405_s1 + $0x40] sm:$0xff]  ;;  %v42_v13 = vld [vmem:[%s3405_s1 + $0x48] sm:$0xff] }
   0xa   :  { %112 = vmatpush.msra.mxu0 %v49_v2  ;;  %v43_v14 = vld [vmem:[%s3405_s1 + $0x50] sm:$0xff]  ;;  %v44_v16 = vld [vmem:[%s3405_s1 + $0x58] sm:$0xff]  ;;  %v45_v18 = vld [vmem:[%s3405_s1 + $0x60] sm:$0xff] }
   0xb   :  { %v178_v15 = vld [vmem:[#allocation2 + $0x90] sm:$0xff]  ;;  %v46_v19 = vld [vmem:[%s3405_s1 + $0x68] sm:$0xff]  ;;  %v197_v21 = vld [vmem:[#allocation2 + $0x120] sm:$0xff] }
   0xc   :  { %113 = vmatpush.msra.mxu0 %v48_v3  ;;  %v166_v17 = vld [vmem:[#allocation2 + $0x30] sm:$0xff]  ;;  %233 = vmatpush.msra.mxu1 %v197_v21  ;;  %v185_v23 = vld [vmem:[#allocation2 + $0xc0] sm:$0xff]  ;;  %v200_v25 = vld [vmem:[#allocation2 + $0x138] sm:$0xff] }
   0xd   :  { %2174 = vmatmul.msk.f32.vlgmr.msra.gmra.mxu0 %vm52_vm0, %v33_v4  ;;  %v47_v20 = vld [vmem:[%s3405_s1 + $0x70] sm:$0xff]  ;;  %2369 = vmatpush.msra.mxu2 %v197_v21  ;;  %v188_v26 = vld [vmem:[#allocation2 + $0xd8] sm:$0xff]  ;;  %v198_v28 = vld [vmem:[#allocation2 + $0x128] sm:$0xff] }
   0xe   :  { %710 = vmatpush.msrb.mxu0 %v178_v15  ;;  %v182_v22 = vld [vmem:[#allocation2 + $0xb0] sm:$0xff]  ;;  %2370 = vmatpush.msra.mxu3 %v197_v21  ;;  %v186_v30 = vld [vmem:[#allocation2 + $0xc8] sm:$0xff]  ;;  %v201_v39 = vld [vmem:[#allocation2 + $0x140] sm:$0xff] }
   0xf   :  { %v170_v24 = vld [vmem:[#allocation2 + $0x50] sm:$0xff]  ;;  %234 = vmatpush.msra.mxu1 %v185_v23  ;;  %2371 = vmatpush.msra.mxu2 %v185_v23  ;;  %v189_v41 = vld [vmem:[#allocation2 + $0xe0] sm:$0xff]  ;;  %v202_v45 = vld [vmem:[#allocation2 + $0x148] sm:$0xff] }
  0x10   :  { %711 = vmatpush.msrb.mxu0 %v166_v17  ;;  %2372 = vmatpush.msra.mxu3 %v185_v23  ;;  %v199_v31 = vld [vmem:[#allocation2 + $0x130] sm:$0xff]  ;;  %v190_v46 = vld [vmem:[#allocation2 + $0xe8] sm:$0xff]  ;;  %v204_v47 = vld [vmem:[#allocation2 + $0x158] sm:$0xff] }
  0x11   :  { %311 = vmatpush.msrb.mxu1 %v200_v25  ;;  %259 = vmatpush.msrb.mxu2 %v198_v28  ;;  %v187_v32 = vld [vmem:[#allocation2 + $0xd0] sm:$0xff]  ;;  %v206_v48 = vld [vmem:[#allocation2 + $0x168] sm:$0xff]  ;;  %v205_v51 = vld [vmem:[#allocation2 + $0x160] sm:$0xff] }
  0x12   :  { %814 = vmatpush.msra.mxu0 %v182_v22  ;;  %285 = vmatpush.msrb.mxu3 %v199_v31  ;;  %v867_v33 = vld [vmem:[#allocation2 + $0x1f0] sm:$0xff]  ;;  %v194_v49 = vld [vmem:[#allocation2 + $0x108] sm:$0xff]  ;;  %v192_v52 = vld [vmem:[#allocation2 + $0xf8] sm:$0xff] }
  0x13   :  { %312 = vmatpush.msrb.mxu1 %v188_v26  ;;  %260 = vmatpush.msrb.mxu2 %v186_v30  ;;  %v855_v35 = vld [vmem:[#allocation2 + $0x190] sm:$0xff]  ;;  %v193_v53 = vld [vmem:[#allocation2 + $0x100] sm:$0xff]  ;;  %v208_v62 = vld [vmem:[#allocation2 + $0x178] sm:$0xff] }
  0x14   :  { %815 = vmatpush.msra.mxu0 %v170_v24  ;;  %286 = vmatpush.msrb.mxu3 %v187_v32  ;;  %v203_v36 = vld [vmem:[#allocation2 + $0x150] sm:$0xff]  ;;  %v172_v59 = vld [vmem:[#allocation2 + $0x60] sm:$0xff]  ;;  %v196_v0 = vld [vmem:[#allocation2 + $0x118] sm:$0xff] }
  0x15   :  { %2175 = vmatmul.msk.f32.gmra.mxu0 %vm52_vm0, %v34_v5  ;;  %v191_v38 = vld [vmem:[#allocation2 + $0xf0] sm:$0xff]  ;;  %v160_v60 = vld [vmem:[#allocation2] sm:$0xff]  ;;  %v173_v5 = vld [vmem:[#allocation2 + $0x68] sm:$0xff] }
  0x16   :  { %v871_v42 = vld [vmem:[#allocation2 + $0x210] sm:$0xff]  ;;  %v176_v15 = vld [vmem:[#allocation2 + $0x80] sm:$0xff]  ;;  %v179_v17 = vld [vmem:[#allocation2 + $0x98] sm:$0xff] }
  0x17   :  { %v859_v43 = vld [vmem:[#allocation2 + $0x1b0] sm:$0xff]  ;;  %v165_v21 = vld [vmem:[#allocation2 + $0x28] sm:$0xff]  ;;  %v180_v26 = vld [vmem:[#allocation2 + $0xa0] sm:$0xff] }
  0x18   :  { %v875_v55 = vld [vmem:[#allocation2 + $0x230] sm:$0xff]  ;;  %v183_v30 = vld [vmem:[#allocation2 + $0xb8] sm:$0xff]  ;;  %v181_v31 = vld [vmem:[#allocation2 + $0xa8] sm:$0xff] }
  0x19   :  { %v863_v56 = vld [vmem:[#allocation2 + $0x1d0] sm:$0xff]  ;;  %v171_v32 = vld [vmem:[#allocation2 + $0x58] sm:$0xff] }
  0x1a   :  { %v207_v58 = vld [vmem:[#allocation2 + $0x170] sm:$0xff] }
  0x1b   :  { %v195_v63 = vld [vmem:[#allocation2 + $0x110] sm:$0xff] }
  0x1c   :  { %v1249_v2 = vld [vmem:[#allocation2 + $0x2b0] sm:$0xff] }
  0x1d   :  { %2176 = vmatmul.msk.f32.gmra.mxu0 %vm52_vm0, %v35_v6  ;;  %v1237_v3 = vld [vmem:[#allocation2 + $0x250] sm:$0xff]  ;;  %v175_v6 = vld [vmem:[#allocation2 + $0x78] sm:$0xff] }
  0x1e   :  { %v1257_v24 = vld [vmem:[#allocation2 + $0x2f0] sm:$0xff] }
  0x1f   :  { %v1245_v25 = vld [vmem:[#allocation2 + $0x290] sm:$0xff] }
  0x25   :  { %2177 = vmatmul.msk.f32.gmra.mxu0 %vm52_vm0, %v36_v7  ;;  %v163_v7 = vld [vmem:[#allocation2 + $0x18] sm:$0xff] }
  0x2d   :  { %2178 = vmatmul.msk.f32.gmra.mxu0 %vm52_vm0, %v37_v8 }
  0x35   :  { %2179 = vmatmul.msk.f32.gmra.mxu0 %vm52_vm0, %v38_v9  ;;  %v174_v9 = vld [vmem:[#allocation2 + $0x70] sm:$0xff] }
  0x3d   :  { %2180 = vmatmul.msk.f32.gmra.mxu0 %vm52_vm0, %v39_v10  ;;  %v161_v10 = vld [vmem:[#allocation2 + $0x8] sm:$0xff] }
  0x45   :  { %2181 = vmatmul.msk.f32.gmra.mxu0 %vm52_vm0, %v40_v11  ;;  %v162_v11 = vld [vmem:[#allocation2 + $0x10] sm:$0xff] }
  0x4d   :  { %2182 = vmatmul.msk.f32.gmra.mxu0 %vm52_vm0, %v41_v12 }
  0x55   :  { %2183 = vmatmul.msk.f32.gmra.mxu0 %vm52_vm0, %v42_v13  ;;  %v1253_v13 = vld [vmem:[#allocation2 + $0x2d0] sm:$0xff] }
  0x5d   :  { %2184 = vmatmul.msk.f32.gmra.mxu0 %vm52_vm0, %v43_v14  ;;  %v1241_v14 = vld [vmem:[#allocation2 + $0x270] sm:$0xff] }
  0x65   :  { %2185 = vmatmul.msk.f32.gmra.mxu0 %vm52_vm0, %v44_v16 }
  0x6d   :  { %2186 = vmatmul.msk.f32.gmra.mxu0 %vm52_vm0, %v45_v18  ;;  %v177_v18 = vld [vmem:[#allocation2 + $0x88] sm:$0xff] }
  0x75   :  { %2187 = vmatmul.msk.f32.gmra.mxu0 %vm52_vm0, %v46_v19  ;;  %v167_v19 = vld [vmem:[#allocation2 + $0x38] sm:$0xff] }
  0x7d   :  { %2188 = vmatmul.msk.f32.gmra.mxu0 %vm52_vm0, %v47_v20  ;;  %v164_v20 = vld [vmem:[#allocation2 + $0x20] sm:$0xff] }
  0x8a   :  { %v2505_v27 = vpop.f32.mrf.mxu0 }
  0x8b   :  { %2243 = vmatmul.msk.f32.vlgmr.msrb.gmra.mxu0 %vm209_vm1, %v2505_v27 }
  0x8c   :  { %952 = vmatpush.msrb.mxu0 %v867_v33  ;;  %v168_v33 = vld [vmem:[#allocation2 + $0x40] sm:$0xff] }
  0x8e   :  { %953 = vmatpush.msrb.mxu0 %v855_v35  ;;  %v169_v35 = vld [vmem:[#allocation2 + $0x48] sm:$0xff] }
  0x92   :  { %v2509_v29 = vpop.f32.mrf.mxu0 }
  0x93   :  { %2244 = vmatmul.msk.f32.gmra.mxu0 %vm209_vm1, %v2509_v29 }
  0x9a   :  { %v2513_v34 = vpop.f32.mrf.mxu0 }
  0x9b   :  { %2245 = vmatmul.msk.f32.gmra.mxu0 %vm209_vm1, %v2513_v34 }
  0xa2   :  { %v2517_v37 = vpop.f32.mrf.mxu0 }
  0xa3   :  { %2189 = vmatmul.msk.f32.vlgmr.msra.gmra.mxu1 %vm209_vm1, %v2517_v37  ;;  %2255 = vmatmul.msk.f32.vlgmr.msra.gmra.mxu0 %vm209_vm1, %v2505_v27 }
  0xa4   :  { %389 = vmatpush.msra.mxu1 %v203_v36  ;;  %1056 = vmatpush.msra.mxu0 %v871_v42  ;;  %v865_v42 = vld [vmem:[#allocation2 + $0x1e0] sm:$0xff] }
  0xa6   :  { %390 = vmatpush.msra.mxu1 %v191_v38  ;;  %1057 = vmatpush.msra.mxu0 %v859_v43 }
  0xaa   :  { %v2523_v40 = vpop.f32.mrf.mxu0 }
  0xab   :  { %2190 = vmatmul.msk.f32.vlgmr.msra.gmra.mxu2 %vm209_vm1, %v2523_v40  ;;  %2198 = vmatmul.msk.f32.vlgmr.msrb.gmra.mxu1 %vm209_vm1, %v2517_v37 }
  0xac   :  { %2256 = vmatmul.msk.f32.gmra.mxu0 %vm209_vm1, %v2509_v29  ;;  %337 = vmatpush.msra.mxu2 %v201_v39  ;;  %v1631_v39 = vld [vmem:[#allocation2 + $0x370] sm:$0xff] }
  0xad   :  { %467 = vmatpush.msrb.mxu1 %v206_v48  ;;  %v856_v48 = vld [vmem:[#allocation2 + $0x198] sm:$0xff] }
  0xae   :  { %338 = vmatpush.msra.mxu2 %v189_v41  ;;  %v1619_v41 = vld [vmem:[#allocation2 + $0x310] sm:$0xff] }
  0xaf   :  { %468 = vmatpush.msrb.mxu1 %v194_v49 }
  0xb2   :  { %v2531_v44 = vpop.f32.mrf.mxu0 }
  0xb3   :  { %2191 = vmatmul.msk.f32.vlgmr.msra.gmra.mxu3 %vm209_vm1, %v2531_v44  ;;  %2192 = vmatmul.msk.f32.vlgmr.msrb.gmra.mxu2 %vm209_vm1, %v2517_v37 }
  0xb4   :  { %2199 = vmatmul.msk.f32.gmra.mxu1 %vm209_vm1, %v2523_v40  ;;  %2257 = vmatmul.msk.f32.gmra.mxu0 %vm209_vm1, %v2513_v34 }
  0xb5   :  { %363 = vmatpush.msra.mxu3 %v202_v45  ;;  %415 = vmatpush.msrb.mxu2 %v204_v47  ;;  %v866_v47 = vld [vmem:[#allocation2 + $0x1e8] sm:$0xff] }
  0xb7   :  { %364 = vmatpush.msra.mxu3 %v190_v46  ;;  %416 = vmatpush.msrb.mxu2 %v192_v52  ;;  %v853_v52 = vld [vmem:[#allocation2 + $0x180] sm:$0xff] }
  0xba   :  { %v2541_v50 = vpop.f32.mrf.mxu0 }
  0xbb   :  { %2193 = vmatmul.msk.f32.gmra.mxu2 %vm209_vm1, %v2523_v40  ;;  %2195 = vmatmul.msk.f32.vlgmr.msrb.gmra.mxu3 %vm209_vm1, %v2517_v37 }
  0xbc   :  { %2200 = vmatmul.msk.f32.gmra.mxu1 %vm209_vm1, %v2531_v44  ;;  %2267 = vmatmul.msk.f32.vlgmr.msrb.gmra.mxu0 %vm209_vm1, %v2541_v50 }
  0xbd   :  { %441 = vmatpush.msrb.mxu3 %v205_v51  ;;  %1160 = vmatpush.msrb.mxu0 %v875_v55 }
  0xbf   :  { %442 = vmatpush.msrb.mxu3 %v193_v53  ;;  %1161 = vmatpush.msrb.mxu0 %v863_v56  ;;  %v854_v53 = vld [vmem:[#allocation2 + $0x188] sm:$0xff] }
  0xc2   :  { %v2551_v54 = vpop.f32.mrf.mxu0 }
  0xc3   :  { %2194 = vmatmul.msk.f32.gmra.mxu2 %vm209_vm1, %v2531_v44  ;;  %2196 = vmatmul.msk.f32.gmra.mxu3 %vm209_vm1, %v2523_v40 }
  0xc4   :  { %2207 = vmatmul.msk.f32.vlgmr.msra.gmra.mxu1 %vm209_vm1, %v2517_v37  ;;  %2268 = vmatmul.msk.f32.gmra.mxu0 %vm209_vm1, %v2551_v54 }
  0xc5   :  { %554 = vmatpush.msra.mxu1 %v172_v59 }
  0xc7   :  { %555 = vmatpush.msra.mxu1 %v160_v60  ;;  %v1635_v60 = vld [vmem:[#allocation2 + $0x390] sm:$0xff] }
  0xca   :  { %v2561_v57 = vpop.f32.mrf.mxu0 }
  0xcb   :  { %2197 = vmatmul.msk.f32.gmra.mxu3 %vm209_vm1, %v2531_v44  ;;  %2201 = vmatmul.msk.f32.vlgmr.msra.gmra.mxu2 %vm209_vm1, %v2517_v37 }
  0xcc   :  { %2208 = vmatmul.msk.f32.gmra.mxu1 %vm209_vm1, %v2523_v40  ;;  %2269 = vmatmul.msk.f32.gmra.mxu0 %vm209_vm1, %v2561_v57 }
  0xcd   :  { %493 = vmatpush.msra.mxu2 %v207_v58 }
  0xcf   :  { %494 = vmatpush.msra.mxu2 %v195_v63 }
  0xd2   :  { %v2571_v61 = vpop.f32.mrf.mxu0 }
  0xd3   :  { %2202 = vmatmul.msk.f32.gmra.mxu2 %vm209_vm1, %v2523_v40  ;;  %2204 = vmatmul.msk.f32.vlgmr.msra.gmra.mxu3 %vm209_vm1, %v2517_v37 }
  0xd4   :  { %2209 = vmatmul.msk.f32.gmra.mxu1 %vm209_vm1, %v2531_v44  ;;  %2279 = vmatmul.msk.f32.vlgmr.msra.gmra.mxu0 %vm209_vm1, %v2541_v50 }
  0xd5   :  { %519 = vmatpush.msra.mxu3 %v208_v62  ;;  %1334 = vmatpush.msra.mxu0 %v1249_v2  ;;  %v869_v2 = vld [vmem:[#allocation2 + $0x200] sm:$0xff] }
  0xd7   :  { %520 = vmatpush.msra.mxu3 %v196_v0  ;;  %1335 = vmatpush.msra.mxu0 %v1237_v3  ;;  %v1623_v0 = vld [vmem:[#allocation2 + $0x330] sm:$0xff] }
  0xda   :  { %v2581_v1 = vpop.f32.mrf.mxu0 }
  0xdb   :  { %2203 = vmatmul.msk.f32.gmra.mxu2 %vm209_vm1, %v2531_v44  ;;  %2205 = vmatmul.msk.f32.gmra.mxu3 %vm209_vm1, %v2523_v40 }
  0xdc   :  { %2216 = vmatmul.msk.f32.vlgmr.msrb.gmra.mxu1 %vm209_vm1, %v2517_v37  ;;  %2280 = vmatmul.msk.f32.gmra.mxu0 %vm209_vm1, %v2551_v54 }
  0xdd   :  { %632 = vmatpush.msrb.mxu1 %v175_v6  ;;  %v872_v6 = vld [vmem:[#allocation2 + $0x218] sm:$0xff] }
  0xdf   :  { %633 = vmatpush.msrb.mxu1 %v163_v7 }
  0xe2   :  { %v2591_v4 = vpop.f32.mrf.mxu0 }
  0xe3   :  { %2206 = vmatmul.msk.f32.gmra.mxu3 %vm209_vm1, %v2531_v44  ;;  %2210 = vmatmul.msk.f32.vlgmr.msrb.gmra.mxu2 %vm209_vm1, %v2517_v37 }
  0xe4   :  { %2217 = vmatmul.msk.f32.gmra.mxu1 %vm209_vm1, %v2523_v40  ;;  %2281 = vmatmul.msk.f32.gmra.mxu0 %vm209_vm1, %v2561_v57 }
  0xe5   :  { %580 = vmatpush.msrb.mxu2 %v173_v5 }
  0xe7   :  { %581 = vmatpush.msrb.mxu2 %v161_v10  ;;  %v870_v10 = vld [vmem:[#allocation2 + $0x208] sm:$0xff] }
  0xea   :  { %v2601_v8 = vpop.f32.mrf.mxu0 }
  0xeb   :  { %2211 = vmatmul.msk.f32.gmra.mxu2 %vm209_vm1, %v2523_v40  ;;  %2213 = vmatmul.msk.f32.vlgmr.msrb.gmra.mxu3 %vm209_vm1, %v2517_v37 }
  0xec   :  { %2218 = vmatmul.msk.f32.gmra.mxu1 %vm209_vm1, %v2531_v44  ;;  %2291 = vmatmul.msk.f32.vlgmr.msrb.gmra.mxu0 %vm209_vm1, %v2541_v50 }
  0xed   :  { %606 = vmatpush.msrb.mxu3 %v174_v9  ;;  %1438 = vmatpush.msrb.mxu0 %v1253_v13 }
  0xef   :  { %607 = vmatpush.msrb.mxu3 %v162_v11  ;;  %1439 = vmatpush.msrb.mxu0 %v1241_v14  ;;  %v860_v11 = vld [vmem:[#allocation2 + $0x1b8] sm:$0xff] }
  0xf2   :  { %v2619_v12 = vpop.f32.mrf.mxu0 }
  0xf3   :  { %2212 = vmatmul.msk.f32.gmra.mxu2 %vm209_vm1, %v2531_v44  ;;  %2214 = vmatmul.msk.f32.gmra.mxu3 %vm209_vm1, %v2523_v40 }
  0xf4   :  { %2225 = vmatmul.msk.f32.vlgmr.msra.gmra.mxu1 %vm209_vm1, %v2505_v27  ;;  %2292 = vmatmul.msk.f32.gmra.mxu0 %vm209_vm1, %v2551_v54 }
  0xf5   :  { %736 = vmatpush.msra.mxu1 %v179_v17  ;;  %v858_v17 = vld [vmem:[#allocation2 + $0x1a8] sm:$0xff] }
  0xf7   :  { %737 = vmatpush.msra.mxu1 %v167_v19 }
  0xfa   :  { %v2629_v16 = vpop.f32.mrf.mxu0 }
  0xfb   :  { %2215 = vmatmul.msk.f32.gmra.mxu3 %vm209_vm1, %v2531_v44  ;;  %2219 = vmatmul.msk.f32.vlgmr.msra.gmra.mxu2 %vm209_vm1, %v2517_v37 }
  0xfc   :  { %2226 = vmatmul.msk.f32.gmra.mxu1 %vm209_vm1, %v2509_v29  ;;  %2293 = vmatmul.msk.f32.gmra.mxu0 %vm209_vm1, %v2561_v57 }
  0xfd   :  { %658 = vmatpush.msra.mxu2 %v176_v15  ;;  %v857_v15 = vld [vmem:[#allocation2 + $0x1a0] sm:$0xff] }
  0xff   :  { %659 = vmatpush.msra.mxu2 %v164_v20 }
 0x103   :  { %2220 = vmatmul.msk.f32.gmra.mxu2 %vm209_vm1, %v2523_v40  ;;  %2222 = vmatmul.msk.f32.vlgmr.msra.gmra.mxu3 %vm209_vm1, %v2517_v37 }
 0x104   :  { %2227 = vmatmul.msk.f32.gmra.mxu1 %vm209_vm1, %v2513_v34  ;;  %2303 = vmatmul.msk.f32.vlgmr.msra.gmra.mxu0 %vm209_vm1, %v2571_v61 }
 0x105   :  { %684 = vmatpush.msra.mxu3 %v177_v18  ;;  %1542 = vmatpush.msra.mxu0 %v1257_v24 }
 0x107   :  { %685 = vmatpush.msra.mxu3 %v165_v21  ;;  %1543 = vmatpush.msra.mxu0 %v1245_v25  ;;  %v1639_v25 = vld [vmem:[#allocation2 + $0x3b0] sm:$0xff] }
 0x108   :  { %v2639_v22 = vpop.f32.mrf.mxu0 }
 0x10b   :  { %2221 = vmatmul.msk.f32.gmra.mxu2 %vm209_vm1, %v2531_v44  ;;  %2223 = vmatmul.msk.f32.gmra.mxu3 %vm209_vm1, %v2523_v40 }
 0x10c   :  { %2234 = vmatmul.msk.f32.vlgmr.msrb.gmra.mxu1 %vm209_vm1, %v2505_v27  ;;  %2304 = vmatmul.msk.f32.gmra.mxu0 %vm209_vm1, %v2581_v1 }
 0x10d   :  { %840 = vmatpush.msrb.mxu1 %v183_v30 }
 0x10f   :  { %841 = vmatpush.msrb.mxu1 %v171_v32 }
 0x110   :  { %v2649_v23 = vpop.f32.mrf.mxu0 }
 0x113   :  { %2224 = vmatmul.msk.f32.gmra.mxu3 %vm209_vm1, %v2531_v44  ;;  %2228 = vmatmul.msk.f32.vlgmr.msrb.gmra.mxu2 %vm209_vm1, %v2505_v27  ;;  %v868_v44 = vld [vmem:[#allocation2 + $0x1f8] sm:$0xff] }
 0x114   :  { %2235 = vmatmul.msk.f32.gmra.mxu1 %vm209_vm1, %v2509_v29  ;;  %2305 = vmatmul.msk.f32.gmra.mxu0 %vm209_vm1, %v2591_v4 }
 0x115   :  { %762 = vmatpush.msrb.mxu2 %v180_v26 }
 0x117   :  { %763 = vmatpush.msrb.mxu2 %v168_v33 }
 0x118   :  { %v2659_v28 = vpop.f32.mrf.mxu0 }
 0x11b   :  { %2229 = vmatmul.msk.f32.gmra.mxu2 %vm209_vm1, %v2509_v29  ;;  %2231 = vmatmul.msk.f32.vlgmr.msrb.gmra.mxu3 %vm209_vm1, %v2505_v27 }
 0x11c   :  { %2236 = vmatmul.msk.f32.gmra.mxu1 %vm209_vm1, %v2513_v34  ;;  %2315 = vmatmul.msk.f32.vlgmr.msrb.gmra.mxu0 %vm209_vm1, %v2571_v61 }
 0x11d   :  { %788 = vmatpush.msrb.mxu3 %v181_v31  ;;  %1716 = vmatpush.msrb.mxu0 %v1631_v39  ;;  %v876_v39 = vld [vmem:[#allocation2 + $0x238] sm:$0xff] }
 0x11f   :  { %789 = vmatpush.msrb.mxu3 %v169_v35  ;;  %1717 = vmatpush.msrb.mxu0 %v1619_v41 }
 0x120   :  { %v2669_v36 = vpop.f32.mrf.mxu1  ;;  %v2671_v37 = vpop.f32.mrf.mxu0 }
 0x121   :  { %3411 = vst [vmem:[#allocation5_spill] sm:$0xff] %v2669_v36 }
 0x123   :  { %2230 = vmatmul.msk.f32.gmra.mxu2 %vm209_vm1, %v2513_v34  ;;  %2232 = vmatmul.msk.f32.gmra.mxu3 %vm209_vm1, %v2509_v29 }
 0x124   :  { %2246 = vmatmul.msk.f32.vlgmr.msra.gmra.mxu1 %vm209_vm1, %v2505_v27  ;;  %2316 = vmatmul.msk.f32.gmra.mxu0 %vm209_vm1, %v2581_v1 }
 0x125   :  { %978 = vmatpush.msra.mxu1 %v868_v44  ;;  %v874_v44 = vld [vmem:[#allocation2 + $0x228] sm:$0xff] }
 0x127   :  { %979 = vmatpush.msra.mxu1 %v856_v48 }
 0x128   :  { %v2681_v38 = vpop.f32.mrf.mxu1 }
 0x129   :  { %3412 = vst [vmem:[#allocation6_spill] sm:$0xff] %v2681_v38  ;;  %v2683_v40 = vpop.f32.mrf.mxu0 }
 0x12b   :  { %2233 = vmatmul.msk.f32.gmra.mxu3 %vm209_vm1, %v2513_v34  ;;  %2237 = vmatmul.msk.f32.vlgmr.msra.gmra.mxu2 %vm209_vm1, %v2505_v27 }
 0x12c   :  { %2247 = vmatmul.msk.f32.gmra.mxu1 %vm209_vm1, %v2509_v29  ;;  %2317 = vmatmul.msk.f32.gmra.mxu0 %vm209_vm1, %v2591_v4 }
 0x12d   :  { %900 = vmatpush.msra.mxu2 %v865_v42 }
 0x12e   :  { %v2693_v43 = vpop.f32.mrf.mxu2 }
 0x12f   :  { %3413 = vst [vmem:[#allocation7_spill] sm:$0xff] %v2693_v43  ;;  %901 = vmatpush.msra.mxu2 %v853_v52  ;;  %v861_v52 = vld [vmem:[#allocation2 + $0x1c0] sm:$0xff] }
 0x131   :  { %v2695_v45 = vpop.f32.mrf.mxu1  ;;  %v2697_v46 = vpop.f32.mrf.mxu0 }
 0x132   :  { %3414 = vst [vmem:[#allocation8_spill] sm:$0xff] %v2695_v45 }
 0x133   :  { %2238 = vmatmul.msk.f32.gmra.mxu2 %vm209_vm1, %v2509_v29  ;;  %2240 = vmatmul.msk.f32.vlgmr.msra.gmra.mxu3 %vm209_vm1, %v2505_v27 }
 0x134   :  { %2248 = vmatmul.msk.f32.gmra.mxu1 %vm209_vm1, %v2513_v34  ;;  %2327 = vmatmul.msk.f32.vlgmr.msra.gmra.mxu0 %vm209_vm1, %v2571_v61 }
 0x135   :  { %926 = vmatpush.msra.mxu3 %v866_v47  ;;  %1820 = vmatpush.msra.mxu0 %v1635_v60  ;;  %v864_v47 = vld [vmem:[#allocation2 + $0x1d8] sm:$0xff] }
 0x136   :  { %v2707_v49 = vpop.f32.mrf.mxu3  ;;  %v2709_v51 = vpop.f32.mrf.mxu2 }
 0x137   :  { %3415 = vst [vmem:[#allocation9_spill] sm:$0xff] %v2707_v49  ;;  %927 = vmatpush.msra.mxu3 %v854_v53  ;;  %1821 = vmatpush.msra.mxu0 %v1623_v0  ;;  %v862_v53 = vld [vmem:[#allocation2 + $0x1c8] sm:$0xff]  ;;  %v1633_v49 = vld [vmem:[#allocation2 + $0x380] sm:$0xff] }
 0x139   :  { %v2711_v55 = vpop.f32.mrf.mxu1  ;;  %v2713_v56 = vpop.f32.mrf.mxu0 }
 0x13a   :  { %3416 = vst [vmem:[#allocation10_spill] sm:$0xff] %v2711_v55  ;;  %v1256_v55 = vld [vmem:[#allocation2 + $0x2e8] sm:$0xff] }
 0x13b   :  { %2239 = vmatmul.msk.f32.gmra.mxu2 %vm209_vm1, %v2513_v34  ;;  %2241 = vmatmul.msk.f32.gmra.mxu3 %vm209_vm1, %v2509_v29 }
 0x13c   :  { %2258 = vmatmul.msk.f32.vlgmr.msrb.gmra.mxu1 %vm209_vm1, %v2505_v27  ;;  %2328 = vmatmul.msk.f32.gmra.mxu0 %vm209_vm1, %v2581_v1 }
 0x13d   :  { %1082 = vmatpush.msrb.mxu1 %v872_v6 }
 0x13e   :  { %v2723_v58 = vpop.f32.mrf.mxu2  ;;  %v2725_v59 = vpop.f32.mrf.mxu3 }
 0x13f   :  { %1083 = vmatpush.msrb.mxu1 %v860_v11 }
 0x141   :  { %v392_v62 = vpop.f32.mrf.mxu1  ;;  %v2727_v63 = vpop.f32.mrf.mxu0 }
 0x142   :  { %v714_v18 = vadd.f32 %v2639_v22, %v392_v62 }
 0x143   :  { %2242 = vmatmul.msk.f32.gmra.mxu3 %vm209_vm1, %v2513_v34  ;;  %2249 = vmatmul.msk.f32.vlgmr.msrb.gmra.mxu2 %vm209_vm1, %v2505_v27 }
 0x144   :  { %2259 = vmatmul.msk.f32.gmra.mxu1 %vm209_vm1, %v2509_v29  ;;  %2329 = vmatmul.msk.f32.gmra.mxu0 %vm209_vm1, %v2591_v4 }
 0x145   :  { %1004 = vmatpush.msrb.mxu2 %v869_v2 }
 0x146   :  { %v2737_v3 = vpop.f32.mrf.mxu2  ;;  %v2739_v5 = vpop.f32.mrf.mxu3 }
 0x147   :  { %1005 = vmatpush.msrb.mxu2 %v857_v15 }
 0x149   :  { %v395_v7 = vpop.f32.mrf.mxu1  ;;  %v2741_v9 = vpop.f32.mrf.mxu0 }
 0x14a   :  { %v717_v22 = vadd.f32 %v2649_v23, %v395_v7  ;;  %v873_v23 = vld [vmem:[#allocation2 + $0x220] sm:$0xff] }
 0x14b   :  { %2250 = vmatmul.msk.f32.gmra.mxu2 %vm209_vm1, %v2509_v29  ;;  %2252 = vmatmul.msk.f32.vlgmr.msrb.gmra.mxu3 %vm209_vm1, %v2505_v27 }
 0x14c   :  { %2260 = vmatmul.msk.f32.gmra.mxu1 %vm209_vm1, %v2513_v34  ;;  %2339 = vmatmul.msk.f32.vlgmr.msrb.gmra.mxu0 %vm209_vm1, %v2601_v8 }
 0x14d   :  { %1030 = vmatpush.msrb.mxu3 %v870_v10  ;;  %1924 = vmatpush.msrb.mxu0 %v1639_v25  ;;  %v1247_v10 = vld [vmem:[#allocation2 + $0x2a0] sm:$0xff] }
 0x14e   :  { %v2751_v13 = vpop.f32.mrf.mxu3  ;;  %v2753_v14 = vpop.f32.mrf.mxu2 }
 0x14f   :  { %1031 = vmatpush.msrb.mxu3 %v858_v17  ;;  %v1250_v17 = vld [vmem:[#allocation2 + $0x2b8] sm:$0xff] }
 0x151   :  { %v398_v19 = vpop.f32.mrf.mxu1  ;;  %v1059_v27 = vpop.f32.mrf.mxu0 }
 0x152   :  { %v2756_v20 = vadd.f32 %v1059_v27, %v714_v18  ;;  %v720_v35 = vadd.f32 %v2659_v28, %v398_v19  ;;  %v1248_v27 = vld [vmem:[#allocation2 + $0x2a8] sm:$0xff] }
 0x153   :  { %2251 = vmatmul.msk.f32.gmra.mxu2 %vm209_vm1, %v2513_v34  ;;  %2253 = vmatmul.msk.f32.gmra.mxu3 %vm209_vm1, %v2509_v29  ;;  %v1627_v29 = vld [vmem:[#allocation2 + $0x350] sm:$0xff] }
 0x154   :  { %2270 = vmatmul.msk.f32.vlgmr.msra.gmra.mxu1 %vm209_vm1, %v2541_v50  ;;  %2340 = vmatmul.msk.f32.gmra.mxu0 %vm209_vm1, %v2619_v12 }
 0x155   :  { %1925 = vmatpush.msrb.mxu0 %v1627_v29  ;;  %1186 = vmatpush.msra.mxu1 %v876_v39  ;;  %v1235_v39 = vld [vmem:[#allocation2 + $0x240] sm:$0xff] }
 0x156   :  { %v2766_v21 = vpop.f32.mrf.mxu2  ;;  %v2768_v24 = vpop.f32.mrf.mxu3 }
 0x157   :  { %1187 = vmatpush.msra.mxu1 %v864_v47 }
 0x159   :  { %v2771_v26 = vpop.f32.mrf.mxu1  ;;  %v1062_v30 = vpop.f32.mrf.mxu0 }
 0x15a   :  { %v2773_v31 = vadd.f32 %v1062_v30, %v717_v22  ;;  %v1238_v22 = vld [vmem:[#allocation2 + $0x258] sm:$0xff] }
 0x15b   :  { %2254 = vmatmul.msk.f32.gmra.mxu3 %vm209_vm1, %v2513_v34  ;;  %2261 = vmatmul.msk.f32.vlgmr.msra.gmra.mxu2 %vm209_vm1, %v2541_v50 }
 0x15c   :  { %2271 = vmatmul.msk.f32.gmra.mxu1 %vm209_vm1, %v2551_v54  ;;  %2341 = vmatmul.msk.f32.gmra.mxu0 %vm209_vm1, %v2629_v16 }
 0x15d   :  { %1108 = vmatpush.msra.mxu2 %v873_v23 }
 0x15e   :  { %v2783_v32 = vpop.f32.mrf.mxu2  ;;  %v2785_v33 = vpop.f32.mrf.mxu3 }
 0x15f   :  { %1109 = vmatpush.msra.mxu2 %v861_v52 }
 0x161   :  { %v2788_v34 = vpop.f32.mrf.mxu1  ;;  %v1065_v41 = vpop.f32.mrf.mxu0 }
 0x162   :  { %v2790_v42 = vadd.f32 %v1065_v41, %v720_v35  ;;  %v1236_v41 = vld [vmem:[#allocation2 + $0x248] sm:$0xff] }
 0x163   :  { %2262 = vmatmul.msk.f32.gmra.mxu2 %vm209_vm1, %v2551_v54  ;;  %2264 = vmatmul.msk.f32.vlgmr.msra.gmra.mxu3 %vm209_vm1, %v2541_v50 }
 0x164   :  { %2272 = vmatmul.msk.f32.gmra.mxu1 %vm209_vm1, %v2561_v57  ;;  %2351 = vmatmul.msk.f32.vlgmr.msra.gmra.mxu0 %vm209_vm1, %v2601_v8 }
 0x165   :  { %1134 = vmatpush.msra.mxu3 %v874_v44 }
 0x166   :  { %v2800_v28 = vpop.f32.mrf.mxu3  ;;  %v2802_v48 = vpop.f32.mrf.mxu2 }
 0x167   :  { %1135 = vmatpush.msra.mxu3 %v862_v53 }
 0x169   :  { %v2804_v60 = vpop.f32.mrf.mxu1  ;;  %v1163_v62 = vpop.f32.mrf.mxu0 }
 0x16a   :  { %3417 = vst [vmem:[#allocation11_spill] sm:$0xff] %v2804_v60  ;;  %v1624_v60 = vld [vmem:[#allocation2 + $0x338] sm:$0xff] }
 0x16b   :  { %2263 = vmatmul.msk.f32.gmra.mxu2 %vm209_vm1, %v2561_v57  ;;  %2265 = vmatmul.msk.f32.gmra.mxu3 %vm209_vm1, %v2551_v54 }
 0x16c   :  { %2282 = vmatmul.msk.f32.vlgmr.msrb.gmra.mxu1 %vm209_vm1, %v2541_v50  ;;  %2352 = vmatmul.msk.f32.gmra.mxu0 %vm209_vm1, %v2619_v12 }
 0x16d   :  { %1360 = vmatpush.msrb.mxu1 %v1250_v17  ;;  %v1251_v17 = vld [vmem:[#allocation2 + $0x2c0] sm:$0xff] }
 0x16e   :  { %v2814_v0 = vpop.f32.mrf.mxu2  ;;  %v2816_v2 = vpop.f32.mrf.mxu3 }
 0x16f   :  { %1361 = vmatpush.msrb.mxu1 %v1238_v22  ;;  %v1254_v22 = vld [vmem:[#allocation2 + $0x2d8] sm:$0xff] }
 0x171   :  { %v2818_v6 = vpop.f32.mrf.mxu1  ;;  %v1166_v7 = vpop.f32.mrf.mxu0 }
 0x172   :  { %3418 = vst [vmem:[#allocation12_spill] sm:$0xff] %v2818_v6 }
 0x173   :  { %2266 = vmatmul.msk.f32.gmra.mxu3 %vm209_vm1, %v2561_v57  ;;  %2273 = vmatmul.msk.f32.vlgmr.msrb.gmra.mxu2 %vm209_vm1, %v2541_v50 }
 0x174   :  { %2283 = vmatmul.msk.f32.gmra.mxu1 %vm209_vm1, %v2551_v54  ;;  %2353 = vmatmul.msk.f32.gmra.mxu0 %vm209_vm1, %v2629_v16 }
 0x175   :  { %1282 = vmatpush.msrb.mxu2 %v1247_v10 }
 0x176   :  { %v2828_v11 = vpop.f32.mrf.mxu2  ;;  %v2830_v15 = vpop.f32.mrf.mxu3 }
 0x177   :  { %1283 = vmatpush.msrb.mxu2 %v1235_v39  ;;  %v1252_v39 = vld [vmem:[#allocation2 + $0x2c8] sm:$0xff] }
 0x179   :  { %v2832_v18 = vpop.f32.mrf.mxu1  ;;  %v1169_v19 = vpop.f32.mrf.mxu0 }
 0x17a   :  { %3419 = vst [vmem:[#allocation13_spill] sm:$0xff] %v2832_v18  ;;  %v1636_v18 = vld [vmem:[#allocation2 + $0x398] sm:$0xff] }
 0x17b   :  { %2274 = vmatmul.msk.f32.gmra.mxu2 %vm209_vm1, %v2551_v54  ;;  %2276 = vmatmul.msk.f32.vlgmr.msrb.gmra.mxu3 %vm209_vm1, %v2541_v50 }
 0x17c   :  { %2284 = vmatmul.msk.f32.gmra.mxu1 %vm209_vm1, %v2561_v57  ;;  %2363 = vmatmul.msk.f32.vlgmr.msrb.gmra.mxu0 %vm209_vm1, %v2601_v8 }
 0x17d   :  { %1308 = vmatpush.msrb.mxu3 %v1248_v27 }
 0x17e   :  { %v2842_v25 = vpop.f32.mrf.mxu3  ;;  %v496_v30 = vpop.f32.mrf.mxu2 }
 0x17f   :  { %v818_v29 = vadd.f32 %v2671_v37, %v496_v30  ;;  %1309 = vmatpush.msrb.mxu3 %v1236_v41 }
 0x181   :  { %v2845_v23 = vpop.f32.mrf.mxu1  ;;  %v1337_v35 = vpop.f32.mrf.mxu0  ;;  %v2847_v44 = vadd.f32 %v1163_v62, %v818_v29 }
 0x182   :  { %3420 = vst [vmem:[#allocation14_spill] sm:$0xff] %v2845_v23 }
 0x183   :  { %2275 = vmatmul.msk.f32.gmra.mxu2 %vm209_vm1, %v2561_v57  ;;  %2277 = vmatmul.msk.f32.gmra.mxu3 %vm209_vm1, %v2551_v54 }
 0x184   :  { %2294 = vmatmul.msk.f32.vlgmr.msra.gmra.mxu1 %vm209_vm1, %v2541_v50  ;;  %2364 = vmatmul.msk.f32.gmra.mxu0 %vm209_vm1, %v2619_v12 }
 0x185   :  { %1464 = vmatpush.msra.mxu1 %v1254_v22 }
 0x186   :  { %v499_v37 = vpop.f32.mrf.mxu2  ;;  %v2857_v47 = vpop.f32.mrf.mxu3 }
 0x187   :  { %v821_v52 = vadd.f32 %v2683_v40, %v499_v37  ;;  %v1242_v37 = vld [vmem:[#allocation2 + $0x278] sm:$0xff] }
 0x188   :  { %1465 = vmatpush.msra.mxu1 %v1242_v37 }
 0x189   :  { %v2860_v53 = vpop.f32.mrf.mxu1  ;;  %v1340_v62 = vpop.f32.mrf.mxu0  ;;  %v2862_v10 = vadd.f32 %v1166_v7, %v821_v52 }
 0x18a   :  { %3421 = vst [vmem:[#allocation15_spill] sm:$0xff] %v2860_v53  ;;  %v1618_v53 = vld [vmem:[#allocation2 + $0x308] sm:$0xff] }
 0x18b   :  { %2278 = vmatmul.msk.f32.gmra.mxu3 %vm209_vm1, %v2561_v57  ;;  %2285 = vmatmul.msk.f32.vlgmr.msra.gmra.mxu2 %vm209_vm1, %v2541_v50 }
 0x18c   :  { %2295 = vmatmul.msk.f32.gmra.mxu1 %vm209_vm1, %v2551_v54  ;;  %2365 = vmatmul.msk.f32.gmra.mxu0 %vm209_vm1, %v2629_v16 }
 0x18d   :  { %1386 = vmatpush.msra.mxu2 %v1251_v17  ;;  %v1239_v17 = vld [vmem:[#allocation2 + $0x260] sm:$0xff] }
 0x18e   :  { %v502_v40 = vpop.f32.mrf.mxu2  ;;  %v2872_v27 = vpop.f32.mrf.mxu3 }
 0x18f   :  { %v824_v7 = vadd.f32 %v2697_v46, %v502_v40  ;;  %v1240_v40 = vld [vmem:[#allocation2 + $0x268] sm:$0xff]  ;;  %1387 = vmatpush.msra.mxu2 %v1239_v17 }
 0x191   :  { %v2875_v30 = vpop.f32.mrf.mxu1  ;;  %v2877_v29 = vpop.f32.mrf.mxu0  ;;  %v2879_v41 = vadd.f32 %v1169_v19, %v824_v7 }
 0x192   :  { %3422 = vst [vmem:[#allocation16_spill] sm:$0xff] %v2875_v30 }
 0x193   :  { %2286 = vmatmul.msk.f32.gmra.mxu2 %vm209_vm1, %v2551_v54  ;;  %2288 = vmatmul.msk.f32.vlgmr.msra.gmra.mxu3 %vm209_vm1, %v2541_v50 }
 0x194   :  { %2296 = vmatmul.msk.f32.gmra.mxu1 %vm209_vm1, %v2561_v57  ;;  %1412 = vmatpush.msra.mxu3 %v1252_v39 }
 0x196   :  { %v2887_v46 = vpop.f32.mrf.mxu3  ;;  %v2889_v52 = vpop.f32.mrf.mxu2  ;;  %1413 = vmatpush.msra.mxu3 %v1240_v40 }
 0x199   :  { %v2891_v19 = vpop.f32.mrf.mxu1  ;;  %v1441_v7 = vpop.f32.mrf.mxu0 }
 0x19a   :  { %3423 = vst [vmem:[#allocation17_spill] sm:$0xff] %v2891_v19  ;;  %v2894_v22 = vadd.f32 %v1441_v7, %v2756_v20 }
 0x19b   :  { %2287 = vmatmul.msk.f32.gmra.mxu2 %vm209_vm1, %v2561_v57  ;;  %2289 = vmatmul.msk.f32.gmra.mxu3 %vm209_vm1, %v2551_v54 }
 0x19c   :  { %2306 = vmatmul.msk.f32.vlgmr.msrb.gmra.mxu1 %vm209_vm1, %v2571_v61 }
 0x19e   :  { %v2902_v50 = vpop.f32.mrf.mxu2  ;;  %v609_v39 = vpop.f32.mrf.mxu3 }
 0x19f   :  { %v610_v37 = vadd.f32 %v609_v39, %v2725_v59  ;;  %v1255_v59 = vld [vmem:[#allocation2 + $0x2e0] sm:$0xff] }
 0x1a1   :  { %v1200_v17 = vadd.f32 %v2713_v56, %v610_v37  ;;  %v2906_v40 = vpop.f32.mrf.mxu1  ;;  %v1444_v20 = vpop.f32.mrf.mxu0 }
 0x1a2   :  { %v2909_v7 = vadd.f32 %v1444_v20, %v2773_v31  ;;  %v1258_v31 = vld [vmem:[#allocation2 + $0x2f8] sm:$0xff] }
 0x1a3   :  { %2290 = vmatmul.msk.f32.gmra.mxu3 %vm209_vm1, %v2561_v57  ;;  %2297 = vmatmul.msk.f32.vlgmr.msrb.gmra.mxu2 %vm209_vm1, %v2571_v61  ;;  %v2915_v54 = vadd.f32 %v1337_v35, %v1200_v17  ;;  %v1246_v17 = vld [vmem:[#allocation2 + $0x298] sm:$0xff] }
 0x1a4   :  { %2307 = vmatmul.msk.f32.gmra.mxu1 %vm209_vm1, %v2581_v1  ;;  %1490 = vmatpush.msrb.mxu2 %v1255_v59 }
 0x1a5   :  { %1568 = vmatpush.msrb.mxu1 %v1258_v31 }
 0x1a6   :  { %v2919_v56 = vpop.f32.mrf.mxu2  ;;  %v612_v39 = vpop.f32.mrf.mxu3 }
 0x1a7   :  { %v613_v37 = vadd.f32 %v612_v39, %v2739_v5  ;;  %1569 = vmatpush.msrb.mxu1 %v1246_v17 }
 0x1a9   :  { %v1212_v20 = vadd.f32 %v2727_v63, %v613_v37  ;;  %v2923_v19 = vpop.f32.mrf.mxu1  ;;  %v1447_v57 = vpop.f32.mrf.mxu0  ;;  %v1244_v37 = vld [vmem:[#allocation2 + $0x288] sm:$0xff] }
 0x1aa   :  { %v2926_v35 = vadd.f32 %v1447_v57, %v2790_v42  ;;  %v1243_v42 = vld [vmem:[#allocation2 + $0x280] sm:$0xff] }
 0x1ab   :  { %2298 = vmatmul.msk.f32.gmra.mxu2 %vm209_vm1, %v2581_v1  ;;  %2300 = vmatmul.msk.f32.vlgmr.msrb.gmra.mxu3 %vm209_vm1, %v2571_v61  ;;  %v1594_v59 = vadd.f32 %v1340_v62, %v1212_v20 }
 0x1ac   :  { %2308 = vmatmul.msk.f32.gmra.mxu1 %vm209_vm1, %v2591_v4  ;;  %1516 = vmatpush.msrb.mxu3 %v1256_v55 }
 0x1ad   :  { %1491 = vmatpush.msrb.mxu2 %v1243_v42 }
 0x1ae   :  { %v615_v63 = vpop.f32.mrf.mxu3  ;;  %v2934_v5 = vpop.f32.mrf.mxu2  ;;  %1517 = vmatpush.msrb.mxu3 %v1244_v37  ;;  %v1630_v37 = vld [vmem:[#allocation2 + $0x368] sm:$0xff] }
 0x1af   :  { %v616_v39 = vadd.f32 %v615_v63, %v2751_v13  ;;  %v1629_v63 = vld [vmem:[#allocation2 + $0x360] sm:$0xff] }
 0x1b1   :  { %v1224_v31 = vadd.f32 %v2741_v9, %v616_v39  ;;  %v2938_v57 = vpop.f32.mrf.mxu1  ;;  %v1545_v30 = vpop.f32.mrf.mxu0  ;;  %v1632_v39 = vld [vmem:[#allocation2 + $0x378] sm:$0xff] }
 0x1b2   :  { %v2941_v62 = vadd.f32 %v1545_v30, %v2847_v44 }
 0x1b3   :  { %2299 = vmatmul.msk.f32.gmra.mxu2 %vm209_vm1, %v2591_v4  ;;  %2301 = vmatmul.msk.f32.gmra.mxu3 %vm209_vm1, %v2581_v1  ;;  %v1606_v55 = vadd.f32 %v2877_v29, %v1224_v31 }
 0x1b4   :  { %2318 = vmatmul.msk.f32.vlgmr.msra.gmra.mxu1 %vm209_vm1, %v2571_v61 }
 0x1b5   :  { %1742 = vmatpush.msra.mxu1 %v1632_v39  ;;  %v1617_v39 = vld [vmem:[#allocation2 + $0x300] sm:$0xff] }
 0x1b6   :  { %v2950_v13 = vpop.f32.mrf.mxu2  ;;  %v2952_v9 = vpop.f32.mrf.mxu3 }
 0x1b9   :  { %v2954_v20 = vpop.f32.mrf.mxu1  ;;  %v1548_v17 = vpop.f32.mrf.mxu0 }
 0x1ba   :  { %v2957_v44 = vadd.f32 %v1548_v17, %v2862_v10  ;;  %v1620_v17 = vld [vmem:[#allocation2 + $0x318] sm:$0xff] }
 0x1bb   :  { %2302 = vmatmul.msk.f32.gmra.mxu3 %vm209_vm1, %v2591_v4  ;;  %2309 = vmatmul.msk.f32.vlgmr.msra.gmra.mxu2 %vm209_vm1, %v2571_v61 }
 0x1bc   :  { %2319 = vmatmul.msk.f32.gmra.mxu1 %vm209_vm1, %v2581_v1  ;;  %1664 = vmatpush.msra.mxu2 %v1629_v63 }
 0x1bd   :  { %1743 = vmatpush.msra.mxu1 %v1620_v17 }
 0x1be   :  { %v2965_v30 = vpop.f32.mrf.mxu2  ;;  %v2967_v29 = vpop.f32.mrf.mxu3  ;;  %1665 = vmatpush.msra.mxu2 %v1617_v39 }
 0x1c1   :  { %v2969_v42 = vpop.f32.mrf.mxu1  ;;  %v1551_v10 = vpop.f32.mrf.mxu0 }
 0x1c2   :  { %v2972_v31 = vadd.f32 %v1551_v10, %v2879_v41 }
 0x1c3   :  { %2310 = vmatmul.msk.f32.gmra.mxu2 %vm209_vm1, %v2581_v1  ;;  %2312 = vmatmul.msk.f32.vlgmr.msra.gmra.mxu3 %vm209_vm1, %v2571_v61 }
 0x1c4   :  { %2320 = vmatmul.msk.f32.gmra.mxu1 %vm209_vm1, %v2591_v4  ;;  %1690 = vmatpush.msra.mxu3 %v1630_v37 }
 0x1c6   :  { %v2980_v63 = vpop.f32.mrf.mxu3  ;;  %v2982_v45 = vpop.f32.mrf.mxu2  ;;  %1691 = vmatpush.msra.mxu3 %v1618_v53 }
 0x1c9   :  { %v2984_v41 = vpop.f32.mrf.mxu1  ;;  %v1719_v10 = vpop.f32.mrf.mxu0 }
 0x1ca   :  { %v2987_v38 = vadd.f32 %v1719_v10, %v2915_v54 }
 0x1cb   :  { %2311 = vmatmul.msk.f32.gmra.mxu2 %vm209_vm1, %v2591_v4  ;;  %2313 = vmatmul.msk.f32.gmra.mxu3 %vm209_vm1, %v2581_v1 }
 0x1cc   :  { %3424 = vst [vmem:[#allocation18_spill] sm:$0xff] %v2987_v38  ;;  %2330 = vmatmul.msk.f32.vlgmr.msrb.gmra.mxu1 %vm209_vm1, %v2571_v61  ;;  %v1638_v38 = vld [vmem:[#allocation2 + $0x3a8] sm:$0xff] }
 0x1cd   :  { %1846 = vmatpush.msrb.mxu1 %v1636_v18 }
 0x1ce   :  { %v2995_v37 = vpop.f32.mrf.mxu2  ;;  %v2997_v17 = vpop.f32.mrf.mxu3 }
 0x1cf   :  { %1847 = vmatpush.msrb.mxu1 %v1624_v60 }
 0x1d1   :  { %v2999_v53 = vpop.f32.mrf.mxu1  ;;  %v1722_v39 = vpop.f32.mrf.mxu0 }
 0x1d2   :  { %3425 = vst [vmem:[#allocation19_spill] sm:$0xff] %v2999_v53  ;;  %v1976_v23 = vadd.f32 %v1722_v39, %v1594_v59  ;;  %v1634_v59 = vld [vmem:[#allocation2 + $0x388] sm:$0xff] }
 0x1d3   :  { %2314 = vmatmul.msk.f32.gmra.mxu3 %vm209_vm1, %v2591_v4  ;;  %2321 = vmatmul.msk.f32.vlgmr.msrb.gmra.mxu2 %vm209_vm1, %v2571_v61 }
 0x1d4   :  { %2331 = vmatmul.msk.f32.gmra.mxu1 %vm209_vm1, %v2581_v1  ;;  %1768 = vmatpush.msrb.mxu2 %v1633_v49  ;;  %v2029_v6 = vrot.slane %v1976_v23, 4 }
 0x1d6   :  { %v3007_v54 = vpop.f32.mrf.mxu2  ;;  %v3009_v10 = vpop.f32.mrf.mxu3 }
 0x1d7   :  { %3426 = vst [vmem:[#allocation20_spill] sm:$0xff] %v3009_v10  ;;  %v1622_v10 = vld [vmem:[#allocation2 + $0x328] sm:$0xff] }
 0x1d9   :  { %v3011_v43 = vpop.f32.mrf.mxu1  ;;  %v1725_v53 = vpop.f32.mrf.mxu0 }
 0x1da   :  { %3427 = vst [vmem:[#allocation21_spill] sm:$0xff] %v3011_v43  ;;  %v1988_v39 = vadd.f32 %v1725_v53, %v1606_v55 }
 0x1db   :  { %2322 = vmatmul.msk.f32.gmra.mxu2 %vm209_vm1, %v2581_v1  ;;  %2324 = vmatmul.msk.f32.vlgmr.msrb.gmra.mxu3 %vm209_vm1, %v2571_v61  ;;  %v1621_v61 = vld [vmem:[#allocation2 + $0x320] sm:$0xff] }
 0x1dc   :  { %v2030_v36 = vrot.slane %v1988_v39, 4  ;;  %2332 = vmatmul.msk.f32.gmra.mxu1 %vm209_vm1, %v2591_v4  ;;  %1794 = vmatpush.msrb.mxu3 %v1634_v59 }
 0x1dd   :  { %1769 = vmatpush.msrb.mxu2 %v1621_v61 }
 0x1de   :  { %v3020_v49 = vsel %vm2022_vm2, %v2029_v6, %v2030_v36  ;;  %v3022_v18 = vmax.f32 %v1976_v23, %v2030_v36  ;;  %v3024_v55 = vpop.f32.mrf.mxu3  ;;  %v3026_v53 = vpop.f32.mrf.mxu2  ;;  %1795 = vmatpush.msrb.mxu3 %v1622_v10  ;;  %v584_v36 = vadd.f32 %v2889_v52, %v2709_v51  ;;  %v740_v10 = vadd.f32 %v2906_v40, %v2802_v48  ;;  %v1637_v40 = vld [vmem:[#allocation2 + $0x3a0] sm:$0xff] }
 0x1df   :  { %3428 = vst [vmem:[#allocation22_spill] sm:$0xff] %v3020_v49 }
 0x1e0   :  { %3429 = vst [vmem:[#allocation23_spill] sm:$0xff] %v3022_v18 }
 0x1e1   :  { %v3030_v39 = vpop.f32.mrf.mxu1  ;;  %v1823_v59 = vpop.f32.mrf.mxu0 }
 0x1e3   :  { %2323 = vmatmul.msk.f32.gmra.mxu2 %vm209_vm1, %v2591_v4  ;;  %2325 = vmatmul.msk.f32.gmra.mxu3 %vm209_vm1, %v2581_v1  ;;  %v587_v1 = vadd.f32 %v2902_v50, %v2723_v58  ;;  %v1628_v50 = vld [vmem:[#allocation2 + $0x358] sm:$0xff] }
 0x1e4   :  { %2342 = vmatmul.msk.f32.vlgmr.msra.gmra.mxu1 %vm209_vm1, %v2601_v8 }
 0x1e6   :  { %v3040_v60 = vpop.f32.mrf.mxu2  ;;  %v929_v6 = vpop.f32.mrf.mxu3 }
 0x1e7   :  { %v3042_v23 = vadd.f32 %v929_v6, %v584_v36  ;;  %v743_v36 = vadd.f32 %v2923_v19, %v2814_v0  ;;  %v1640_v6 = vld [vmem:[#allocation2 + $0x3b8] sm:$0xff] }
 0x1e8   :  { %1950 = vmatpush.msra.mxu1 %v1640_v6 }
 0x1e9   :  { %v1085_v61 = vpop.f32.mrf.mxu1  ;;  %v1826_v43 = vpop.f32.mrf.mxu0 }
 0x1ea   :  { %v3046_v49 = vadd.f32 %v1085_v61, %v740_v10  ;;  %1951 = vmatpush.msra.mxu1 %v1628_v50 }
 0x1eb   :  { %2326 = vmatmul.msk.f32.gmra.mxu3 %vm209_vm1, %v2591_v4  ;;  %2333 = vmatmul.msk.f32.vlgmr.msra.gmra.mxu2 %vm209_vm1, %v2601_v8  ;;  %v1980_v4 = vadd.f32 %v1826_v43, %v2909_v7  ;;  %v590_v43 = vadd.f32 %v2919_v56, %v2737_v3  ;;  %v662_v7 = vadd.f32 %v2934_v5, %v2753_v14  ;;  %v1625_v56 = vld [vmem:[#allocation2 + $0x340] sm:$0xff]  ;;  %v1626_v14 = vld [vmem:[#allocation2 + $0x348] sm:$0xff] }
 0x1ec   :  { %2343 = vmatmul.msk.f32.gmra.mxu1 %vm209_vm1, %v2619_v12  ;;  %1872 = vmatpush.msra.mxu2 %v1637_v40 }
 0x1ed   :  { %v2041_v0 = vrot.slane %v1980_v4, 4 }
 0x1ee   :  { %v3056_v51 = vpop.f32.mrf.mxu2  ;;  %v932_v52 = vpop.f32.mrf.mxu3  ;;  %1873 = vmatpush.msra.mxu2 %v1625_v56 }
 0x1ef   :  { %v3058_v48 = vadd.f32 %v932_v52, %v587_v1 }
 0x1f1   :  { %v1088_v10 = vpop.f32.mrf.mxu1  ;;  %v1829_v61 = vpop.f32.mrf.mxu0 }
 0x1f2   :  { %v3063_v18 = vadd.f32 %v1088_v10, %v743_v36  ;;  %v1992_v58 = vadd.f32 %v1829_v61, %v2926_v35  ;;  %v3077_v35 = vadd.f32 %v1823_v59, %v2894_v22  ;;  %v746_v22 = vadd.f32 %v2938_v57, %v2828_v11 }
 0x1f3   :  { %2334 = vmatmul.msk.f32.gmra.mxu2 %vm209_vm1, %v2619_v12  ;;  %2336 = vmatmul.msk.f32.vlgmr.msra.gmra.mxu3 %vm209_vm1, %v2601_v8  ;;  %v665_v10 = vadd.f32 %v2950_v13, %v2766_v21  ;;  %v688_v11 = vadd.f32 %v2952_v9, %v2768_v24  ;;  %v668_v21 = vadd.f32 %v2965_v30, %v2783_v32 }
 0x1f4   :  { %v2042_v19 = vrot.slane %v1992_v58, 4  ;;  %2344 = vmatmul.msk.f32.gmra.mxu1 %vm209_vm1, %v2629_v16  ;;  %1898 = vmatpush.msra.mxu3 %v1638_v38  ;;  %v691_v24 = vadd.f32 %v2967_v29, %v2785_v33 }
 0x1f6   :  { %v3080_v1 = vsel %vm2022_vm2, %v2041_v0, %v2042_v19  ;;  %v3082_v52 = vmax.f32 %v1980_v4, %v2042_v19  ;;  %v935_v40 = vpop.f32.mrf.mxu3  ;;  %v1007_v36 = vpop.f32.mrf.mxu2  ;;  %1899 = vmatpush.msra.mxu3 %v1626_v14  ;;  %v844_v0 = vadd.f32 %v2954_v20, %v2857_v47 }
 0x1f7   :  { %v2089_v38 = vmax.f32 %v3077_v35, %v3080_v1  ;;  %v3086_v6 = vadd.f32 %v935_v40, %v590_v43  ;;  %v3088_v3 = vadd.f32 %v1007_v36, %v662_v7  ;;  %v847_v40 = vadd.f32 %v2969_v42, %v2872_v27 }
 0x1f8   :  { %v694_v27 = vadd.f32 %v2980_v63, %v2800_v28  ;;  %v792_v63 = vadd.f32 %v2997_v17, %v2771_v26  ;;  %v772_v26 = vadd.f32 %v3007_v54, %v2842_v25 }
 0x1f9   :  { %v1091_v5 = vpop.f32.mrf.mxu1  ;;  %v1927_v59 = vpop.f32.mrf.mxu0 }
 0x1fa   :  { %v3092_v4 = vadd.f32 %v1091_v5, %v746_v22  ;;  %v3143_v29 = vadd.f32 %v1927_v59, %v2941_v62  ;;  %v769_v62 = vadd.f32 %v2995_v37, %v2830_v15  ;;  %v3430_v15 = vld [vmem:[#allocation20_spill] sm:$0xff] }
 0x1fb   :  { %2335 = vmatmul.msk.f32.gmra.mxu2 %vm209_vm1, %v2629_v16  ;;  %2337 = vmatmul.msk.f32.gmra.mxu3 %vm209_vm1, %v2619_v12  ;;  %v795_v37 = vadd.f32 %v3430_v15, %v2788_v34  ;;  %v3433_v34 = vld [vmem:[#allocation11_spill] sm:$0xff] }
 0x1fc   :  { %2354 = vmatmul.msk.f32.vlgmr.msrb.gmra.mxu1 %vm209_vm1, %v2601_v8  ;;  %v798_v25 = vadd.f32 %v3024_v55, %v3433_v34 }
 0x1fe   :  { %v1010_v57 = vpop.f32.mrf.mxu2  ;;  %v1033_v61 = vpop.f32.mrf.mxu3 }
 0x1ff   :  { %v3104_v58 = vadd.f32 %v1010_v57, %v665_v10  ;;  %v3106_v50 = vadd.f32 %v1033_v61, %v688_v11 }
 0x201   :  { %v1189_v19 = vpop.f32.mrf.mxu1  ;;  %v1930_v43 = vpop.f32.mrf.mxu0 }
 0x202   :  { %v3110_v7 = vadd.f32 %v1189_v19, %v844_v0  ;;  %v1984_v36 = vadd.f32 %v1930_v43, %v2957_v44  ;;  %v766_v44 = vadd.f32 %v2982_v45, %v2816_v2  ;;  %v850_v45 = vadd.f32 %v2984_v41, %v2887_v46 }
 0x203   :  { %2338 = vmatmul.msk.f32.gmra.mxu3 %vm209_vm1, %v2629_v16  ;;  %2345 = vmatmul.msk.f32.vlgmr.msrb.gmra.mxu2 %vm209_vm1, %v2601_v8 }
 0x204   :  { %2355 = vmatmul.msk.f32.gmra.mxu1 %vm209_vm1, %v2619_v12  ;;  %v2053_v33 = vrot.slane %v1984_v36, 4 }
 0x206   :  { %v1013_v47 = vpop.f32.mrf.mxu2  ;;  %v1036_v13 = vpop.f32.mrf.mxu3 }
 0x207   :  { %v3122_v9 = vadd.f32 %v1013_v47, %v668_v21  ;;  %v3124_v20 = vadd.f32 %v1036_v13, %v691_v24  ;;  %v3431_v13 = vld [vmem:[#allocation5_spill] sm:$0xff] }
 0x209   :  { %v1192_v56 = vpop.f32.mrf.mxu1  ;;  %v1933_v14 = vpop.f32.mrf.mxu0 }
 0x20a   :  { %v3129_v22 = vadd.f32 %v1192_v56, %v847_v40  ;;  %v1996_v32 = vadd.f32 %v1933_v14, %v2972_v31  ;;  %v3432_v40 = vld [vmem:[#allocation12_spill] sm:$0xff] }
 0x20b   :  { %2346 = vmatmul.msk.f32.gmra.mxu2 %vm209_vm1, %v2619_v12  ;;  %2348 = vmatmul.msk.f32.vlgmr.msrb.gmra.mxu3 %vm209_vm1, %v2601_v8 }
 0x20c   :  { %v2054_v30 = vrot.slane %v1996_v32, 4  ;;  %2356 = vmatmul.msk.f32.gmra.mxu1 %vm209_vm1, %v2629_v16 }
 0x20e   :  { %v3146_v42 = vsel %vm2022_vm2, %v2053_v33, %v2054_v30  ;;  %v3148_v31 = vmax.f32 %v1984_v36, %v2054_v30  ;;  %v1039_v5 = vpop.f32.mrf.mxu3  ;;  %v1111_v10 = vpop.f32.mrf.mxu2  ;;  %v558_v36 = vadd.f32 %v3432_v40, %v3431_v13 }
 0x20f   :  { %v2093_v11 = vmax.f32 %v3143_v29, %v3146_v42  ;;  %v3152_v57 = vadd.f32 %v1039_v5, %v694_v27  ;;  %v3154_v61 = vadd.f32 %v1111_v10, %v766_v44  ;;  %v3434_v27 = vld [vmem:[#allocation7_spill] sm:$0xff]  ;;  %v3435_v44 = vld [vmem:[#allocation13_spill] sm:$0xff] }
 0x210   :  { %v1198_v54 = vadd.f32 %v3026_v53, %v558_v36  ;;  %v561_v5 = vadd.f32 %v3435_v44, %v3434_v27 }
 0x211   :  { %v1195_v28 = vpop.f32.mrf.mxu1 }
 0x212   :  { %v3158_v2 = vadd.f32 %v1195_v28, %v850_v45 }
 0x213   :  { %2347 = vmatmul.msk.f32.gmra.mxu2 %vm209_vm1, %v2629_v16  ;;  %2349 = vmatmul.msk.f32.gmra.mxu3 %vm209_vm1, %v2619_v12 }
 0x214   :  { %2366 = vmatmul.msk.f32.vlgmr.msra.gmra.mxu1 %vm209_vm1, %v2601_v8 }
 0x216   :  { %v1114_v59 = vpop.f32.mrf.mxu2  ;;  %v1137_v46 = vpop.f32.mrf.mxu3 }
 0x217   :  { %v3170_v41 = vadd.f32 %v1114_v59, %v769_v62  ;;  %v3172_v0 = vadd.f32 %v1137_v46, %v792_v63  ;;  %v3436_v63 = vld [vmem:[#allocation9_spill] sm:$0xff]  ;;  %v3437_v59 = vld [vmem:[#allocation14_spill] sm:$0xff] }
 0x218   :  { %v564_v46 = vadd.f32 %v3437_v59, %v3436_v63 }
 0x219   :  { %v3174_v19 = vpop.f32.mrf.mxu1 }
 0x21b   :  { %2350 = vmatmul.msk.f32.gmra.mxu3 %vm209_vm1, %v2629_v16  ;;  %2357 = vmatmul.msk.f32.vlgmr.msra.gmra.mxu2 %vm209_vm1, %v2601_v8 }
 0x21c   :  { %2367 = vmatmul.msk.f32.gmra.mxu1 %vm209_vm1, %v2619_v12 }
 0x21e   :  { %v1117_v17 = vpop.f32.mrf.mxu2  ;;  %v1140_v43 = vpop.f32.mrf.mxu3 }
 0x21f   :  { %v3186_v21 = vadd.f32 %v1117_v17, %v772_v26  ;;  %v3188_v24 = vadd.f32 %v1140_v43, %v795_v37 }
 0x221   :  { %v3190_v47 = vpop.f32.mrf.mxu1 }
 0x223   :  { %2358 = vmatmul.msk.f32.gmra.mxu2 %vm209_vm1, %v2619_v12  ;;  %2360 = vmatmul.msk.f32.vlgmr.msra.gmra.mxu3 %vm209_vm1, %v2601_v8  ;;  %v1210_v8 = vadd.f32 %v3040_v60, %v561_v5 }
 0x224   :  { %2368 = vmatmul.msk.f32.gmra.mxu1 %vm209_vm1, %v2629_v16 }
 0x226   :  { %v1143_v56 = vpop.f32.mrf.mxu3  ;;  %v1285_v14 = vpop.f32.mrf.mxu2 }
 0x227   :  { %v3203_v32 = vadd.f32 %v1143_v56, %v798_v25  ;;  %v3205_v33 = vadd.f32 %v1285_v14, %v1198_v54 }
 0x229   :  { %v3207_v30 = vpop.f32.mrf.mxu1 }
 0x22b   :  { %2359 = vmatmul.msk.f32.gmra.mxu2 %vm209_vm1, %v2629_v16  ;;  %2361 = vmatmul.msk.f32.gmra.mxu3 %vm209_vm1, %v2619_v12  ;;  %v1222_v12 = vadd.f32 %v3056_v51, %v564_v46 }
 0x22e   :  { %v1288_v55 = vpop.f32.mrf.mxu2  ;;  %v1311_v53 = vpop.f32.mrf.mxu3 }
 0x22f   :  { %v3216_v10 = vadd.f32 %v1288_v55, %v1210_v8  ;;  %v3219_v45 = vadd.f32 %v1311_v53, %v3042_v23  ;;  %v3439_v55 = vld [vmem:[#allocation15_spill] sm:$0xff] }
 0x230   :  { %v3440_v53 = vld [vmem:[#allocation19_spill] sm:$0xff] }
 0x231   :  { %v1467_v28 = vpop.f32.mrf.mxu1 }
 0x232   :  { %v3222_v62 = vadd.f32 %v1467_v28, %v3046_v49 }
 0x233   :  { %2362 = vmatmul.msk.f32.gmra.mxu3 %vm209_vm1, %v2629_v16 }
 0x236   :  { %v1291_v60 = vpop.f32.mrf.mxu2  ;;  %v1314_v26 = vpop.f32.mrf.mxu3 }
 0x237   :  { %v3229_v15 = vadd.f32 %v1291_v60, %v1222_v12  ;;  %v3232_v37 = vadd.f32 %v1314_v26, %v3058_v48  ;;  %v3442_v60 = vld [vmem:[#allocation16_spill] sm:$0xff] }
 0x239   :  { %v1470_v23 = vpop.f32.mrf.mxu1 }
 0x23a   :  { %v3235_v17 = vadd.f32 %v1470_v23, %v3063_v18  ;;  %v3443_v23 = vld [vmem:[#allocation21_spill] sm:$0xff] }
 0x23e   :  { %v1317_v49 = vpop.f32.mrf.mxu3  ;;  %v1389_v43 = vpop.f32.mrf.mxu2 }
 0x23f   :  { %v3238_v13 = vadd.f32 %v1317_v49, %v3086_v6  ;;  %v3241_v16 = vadd.f32 %v1389_v43, %v3088_v3 }
 0x241   :  { %v1473_v51 = vpop.f32.mrf.mxu1 }
 0x242   :  { %v3244_v40 = vadd.f32 %v1473_v51, %v3092_v4 }
 0x246   :  { %v1392_v36 = vpop.f32.mrf.mxu2  ;;  %v1415_v34 = vpop.f32.mrf.mxu3 }
 0x247   :  { %v3247_v48 = vadd.f32 %v1392_v36, %v3104_v58  ;;  %v3250_v18 = vadd.f32 %v1415_v34, %v3106_v50 }
 0x249   :  { %v1571_v25 = vpop.f32.mrf.mxu1 }
 0x24a   :  { %v3253_v54 = vadd.f32 %v1571_v25, %v3110_v7  ;;  %v3444_v25 = vld [vmem:[#allocation10_spill] sm:$0xff] }
 0x24e   :  { %v1395_v6 = vpop.f32.mrf.mxu2  ;;  %v1418_v56 = vpop.f32.mrf.mxu3 }
 0x24f   :  { %v3256_v3 = vadd.f32 %v1395_v6, %v3122_v9  ;;  %v3259_v4 = vadd.f32 %v1418_v56, %v3124_v20  ;;  %v3438_v9 = vld [vmem:[#allocation6_spill] sm:$0xff]  ;;  %v3445_v6 = vld [vmem:[#allocation17_spill] sm:$0xff] }
 0x250   :  { %v636_v20 = vadd.f32 %v3439_v55, %v3438_v9  ;;  %v642_v56 = vadd.f32 %v3445_v6, %v3444_v25 }
 0x251   :  { %v1574_v14 = vpop.f32.mrf.mxu1 }
 0x252   :  { %v3262_v27 = vadd.f32 %v1574_v14, %v3129_v22  ;;  %v1201_v28 = vadd.f32 %v3440_v53, %v636_v20  ;;  %v1225_v14 = vadd.f32 %v3030_v39, %v642_v56 }
 0x256   :  { %v1421_v58 = vpop.f32.mrf.mxu3  ;;  %v1493_v44 = vpop.f32.mrf.mxu2 }
 0x257   :  { %v3265_v50 = vadd.f32 %v1421_v58, %v3152_v57  ;;  %v3268_v7 = vadd.f32 %v1493_v44, %v3154_v61  ;;  %v1583_v61 = vadd.f32 %v3174_v19, %v1201_v28 }
 0x259   :  { %v1577_v5 = vpop.f32.mrf.mxu1 }
 0x25a   :  { %v3271_v8 = vadd.f32 %v1577_v5, %v3158_v2  ;;  %v3441_v2 = vld [vmem:[#allocation8_spill] sm:$0xff] }
 0x25b   :  { %v639_v26 = vadd.f32 %v3442_v60, %v3441_v2  ;;  %v3314_v2 = vld [vmem:[%s3407_s3] sm:$0x3f] }
 0x25d   :  { %v1213_v49 = vadd.f32 %v3443_v23, %v639_v26 }
 0x25e   :  { %v1496_v63 = vpop.f32.mrf.mxu2  ;;  %v1519_v22 = vpop.f32.mrf.mxu3 }
 0x25f   :  { %v3277_v59 = vadd.f32 %v1496_v63, %v3170_v41  ;;  %v3280_v57 = vadd.f32 %v1519_v22, %v3172_v0  ;;  %v1595_v0 = vadd.f32 %v3190_v47, %v1213_v49 }
 0x261   :  { %v1745_v46 = vpop.f32.mrf.mxu1 }
 0x262   :  { %v3283_v12 = vadd.f32 %v1745_v46, %v1583_v61 }
 0x266   :  { %v1499_v43 = vpop.f32.mrf.mxu2  ;;  %v1522_v51 = vpop.f32.mrf.mxu3 }
 0x267   :  { %v3289_v36 = vadd.f32 %v1499_v43, %v3186_v21  ;;  %v3292_v41 = vadd.f32 %v1522_v51, %v3188_v24  ;;  %v1607_v21 = vadd.f32 %v3207_v30, %v1225_v14 }
 0x269   :  { %v1748_v34 = vpop.f32.mrf.mxu1 }
 0x26a   :  { %v1977_v19 = vadd.f32 %v1748_v34, %v1595_v0  ;;  %v2121_v0 = vperm.slane %v3314_v2, 0 }
 0x26c   :  { %v2032_v24 = vrot.slane %v1977_v19, 4 }
 0x26e   :  { %v1525_v58 = vpop.f32.mrf.mxu3  ;;  %v1667_v44 = vpop.f32.mrf.mxu2 }
 0x26f   :  { %v3299_v5 = vadd.f32 %v1525_v58, %v3203_v32  ;;  %v1962_v49 = vadd.f32 %v1667_v44, %v3205_v33 }
 0x271   :  { %v1751_v9 = vpop.f32.mrf.mxu1 }
 0x272   :  { %v1989_v55 = vadd.f32 %v1751_v9, %v1607_v21 }
 0x274   :  { %v2033_v20 = vrot.slane %v1989_v55, 4 }
 0x276   :  { %v3303_v47 = vsel %vm2022_vm2, %v2032_v24, %v2033_v20  ;;  %v3305_v53 = vmax.f32 %v1977_v19, %v2033_v20  ;;  %v1670_v28 = vpop.f32.mrf.mxu2  ;;  %v1693_v63 = vpop.f32.mrf.mxu3 }
 0x277   :  { %v2086_v39 = vmax.f32 %v3283_v12, %v3303_v47  ;;  %v1974_v32 = vadd.f32 %v1670_v28, %v3216_v10 }
 0x279   :  { %v1849_v22 = vpop.f32.mrf.mxu1  ;;  %v2023_v60 = vrot.slane %v1974_v32, 4 }
 0x27a   :  { %v1969_v20 = vadd.f32 %v1849_v22, %v3222_v62 }
 0x27e   :  { %v1673_v61 = vpop.f32.mrf.mxu2  ;;  %v1696_v46 = vpop.f32.mrf.mxu3 }
 0x27f   :  { %v1986_v30 = vadd.f32 %v1673_v61, %v3229_v15  ;;  %v1975_v15 = vadd.f32 %v1696_v46, %v3232_v37 }
 0x281   :  { %v2024_v26 = vrot.slane %v1986_v30, 4  ;;  %v1852_v23 = vpop.f32.mrf.mxu1  ;;  %v2026_v21 = vrot.slane %v1975_v15, 4 }
 0x282   :  { %v1981_v58 = vadd.f32 %v1852_v23, %v3235_v17 }
 0x283   :  { %v2025_v43 = vsel %vm2022_vm2, %v2023_v60, %v2024_v26  ;;  %v2095_v51 = vmax.f32 %v1974_v32, %v2024_v26 }
 0x284   :  { %v2083_v10 = vmax.f32 %v1962_v49, %v2025_v43 }
 0x285   :  { %v2113_v34 = vmax.f32 %v2095_v51, %v3082_v52  ;;  %v1963_v52 = vadd.f32 %v1693_v63, %v3219_v45 }
 0x286   :  { %v2107_v19 = vmax.f32 %v2083_v10, %v2089_v38  ;;  %v1699_v25 = vpop.f32.mrf.mxu3  ;;  %v1771_v6 = vpop.f32.mrf.mxu2  ;;  %v2044_v38 = vrot.slane %v1981_v58, 4 }
 0x287   :  { %v2139_v56 = vadd.f32 %v2121_v0, %v2113_v34  ;;  %v1987_v14 = vadd.f32 %v1699_v25, %v3238_v13 }
 0x288   :  { %v2133_v33 = vadd.f32 %v2121_v0, %v2107_v19  ;;  %v1966_v19 = vadd.f32 %v1771_v6, %v3241_v16 }
 0x289   :  { %v2151_v44 = vmax.f32 %v2139_v56, 0.0  ;;  %v2027_v9 = vrot.slane %v1987_v14, 4  ;;  %v1855_v55 = vpop.f32.mrf.mxu1  ;;  %v2125_v56 = vperm.slane %v3314_v2, 4 }
 0x28a   :  { %v2145_v24 = vmax.f32 %v2133_v33, 0.0  ;;  %v1993_v37 = vadd.f32 %v1855_v55, %v3244_v40  ;;  %v2122_v40 = vperm.slane %v3314_v2, 1 }
 0x28b   :  { %2163 = vst [vmem:[%s3408_s4 + $0x30] sm:$0xf] %v2151_v44  ;;  %v2028_v35 = vsel %vm2022_vm2, %v2026_v21, %v2027_v9  ;;  %v2096_v1 = vmax.f32 %v1975_v15, %v2027_v9 }
 0x28c   :  { %2157 = vst [vmem:[%s3408_s4] sm:$0xff] %v2145_v24  ;;  %v2084_v17 = vmax.f32 %v1963_v52, %v2028_v35  ;;  %v2045_v13 = vrot.slane %v1993_v37, 4 }
 0x28e   :  { %v2046_v45 = vsel %vm2022_vm2, %v2044_v38, %v2045_v13  ;;  %v2102_v28 = vmax.f32 %v1981_v58, %v2045_v13  ;;  %v1774_v63 = vpop.f32.mrf.mxu2  ;;  %v1797_v32 = vpop.f32.mrf.mxu3 }
 0x28f   :  { %v2090_v61 = vmax.f32 %v1969_v20, %v2046_v45  ;;  %v1978_v51 = vadd.f32 %v1774_v63, %v3247_v48 }
 0x290   :  { %v2114_v46 = vmax.f32 %v2096_v1, %v2102_v28 }
 0x291   :  { %v2108_v30 = vmax.f32 %v2084_v17, %v2090_v61  ;;  %v1953_v60 = vpop.f32.mrf.mxu1  ;;  %v2035_v10 = vrot.slane %v1978_v51, 4 }
 0x292   :  { %v2140_v26 = vadd.f32 %v2122_v40, %v2114_v46  ;;  %v1973_v38 = vadd.f32 %v1953_v60, %v3253_v54 }
 0x293   :  { %v2134_v23 = vadd.f32 %v2122_v40, %v2108_v30 }
 0x294   :  { %v2152_v49 = vmax.f32 %v2140_v26, 0.0 }
 0x295   :  { %v2146_v43 = vmax.f32 %v2134_v23, 0.0 }
 0x296   :  { %2164 = vst [vmem:[%s3408_s4 + $0x38] sm:$0xf] %v2152_v49  ;;  %v1777_v62 = vpop.f32.mrf.mxu2  ;;  %v1800_v22 = vpop.f32.mrf.mxu3 }
 0x297   :  { %2158 = vst [vmem:[%s3408_s4 + $0x8] sm:$0xff] %v2146_v43  ;;  %v1990_v0 = vadd.f32 %v1777_v62, %v3256_v3  ;;  %v1979_v58 = vadd.f32 %v1800_v22, %v3259_v4 }
 0x299   :  { %v2036_v34 = vrot.slane %v1990_v0, 4  ;;  %v1956_v15 = vpop.f32.mrf.mxu1  ;;  %v2038_v24 = vrot.slane %v1979_v58, 4  ;;  %v3446_v0 = vld [vmem:[#allocation23_spill] sm:$0xff] }
 0x29a   :  { %v1985_v6 = vadd.f32 %v1956_v15, %v3262_v27  ;;  %v3447_v15 = vld [vmem:[#allocation18_spill] sm:$0xff] }
 0x29b   :  { %v2037_v25 = vsel %vm2022_vm2, %v2035_v10, %v2036_v34  ;;  %v2099_v48 = vmax.f32 %v1978_v51, %v2036_v34 }
 0x29c   :  { %v2087_v14 = vmax.f32 %v1966_v19, %v2037_v25  ;;  %v3448_v19 = vld [vmem:[#allocation22_spill] sm:$0xff] }
 0x29d   :  { %v2117_v33 = vmax.f32 %v2099_v48, %v3148_v31  ;;  %v1967_v31 = vadd.f32 %v1797_v32, %v3250_v18  ;;  %v3449_v25 = vmax.f32 %v3447_v15, %v3448_v19 }
 0x29e   :  { %v2111_v44 = vmax.f32 %v2087_v14, %v2093_v11  ;;  %v1803_v3 = vpop.f32.mrf.mxu3  ;;  %v1875_v21 = vpop.f32.mrf.mxu2  ;;  %v2056_v11 = vrot.slane %v1985_v6, 4 }
 0x29f   :  { %v2143_v9 = vadd.f32 %v2125_v56, %v2117_v33  ;;  %v1991_v55 = vadd.f32 %v1803_v3, %v3265_v50  ;;  %v1970_v43 = vadd.f32 %v1875_v21, %v3268_v7 }
 0x2a0   :  { %v2137_v16 = vadd.f32 %v2125_v56, %v2111_v44 }
 0x2a1   :  { %v2155_v52 = vmax.f32 %v2143_v9, 0.0  ;;  %v2039_v37 = vrot.slane %v1991_v55, 4  ;;  %v1959_v35 = vpop.f32.mrf.mxu1  ;;  %v2124_v55 = vperm.slane %v3314_v2, 3 }
 0x2a2   :  { %v2149_v1 = vmax.f32 %v2137_v16, 0.0  ;;  %v1997_v4 = vadd.f32 %v1959_v35, %v3271_v8  ;;  %v2126_v8 = vperm.slane %v3314_v2, 5 }
 0x2a3   :  { %2167 = vst [vmem:[%s3408_s4 + $0x50] sm:$0xf] %v2155_v52  ;;  %v2040_v29 = vsel %vm2022_vm2, %v2038_v24, %v2039_v37  ;;  %v2100_v42 = vmax.f32 %v1979_v58, %v2039_v37 }
 0x2a4   :  { %2161 = vst [vmem:[%s3408_s4 + $0x20] sm:$0xff] %v2149_v1  ;;  %v2088_v27 = vmax.f32 %v1967_v31, %v2040_v29  ;;  %v2057_v50 = vrot.slane %v1997_v4, 4 }
 0x2a6   :  { %v2058_v18 = vsel %vm2022_vm2, %v2056_v11, %v2057_v50  ;;  %v2106_v17 = vmax.f32 %v1985_v6, %v2057_v50  ;;  %v1878_v13 = vpop.f32.mrf.mxu2  ;;  %v1901_v20 = vpop.f32.mrf.mxu3 }
 0x2a7   :  { %v2094_v45 = vmax.f32 %v1973_v38, %v2058_v18  ;;  %v1982_v30 = vadd.f32 %v1878_v13, %v3277_v59  ;;  %v2123_v59 = vperm.slane %v3314_v2, 2  ;;  %v1971_v3 = vadd.f32 %v1901_v20, %v3280_v57 }
 0x2a8   :  { %v2118_v28 = vmax.f32 %v2100_v42, %v2106_v17 }
 0x2a9   :  { %v2112_v40 = vmax.f32 %v2088_v27, %v2094_v45  ;;  %v2047_v23 = vrot.slane %v1982_v30, 4 }
 0x2aa   :  { %v2144_v63 = vadd.f32 %v2126_v8, %v2118_v28 }
 0x2ab   :  { %v2138_v32 = vadd.f32 %v2126_v8, %v2112_v40 }
 0x2ac   :  { %v2156_v61 = vmax.f32 %v2144_v63, 0.0 }
 0x2ad   :  { %v2150_v46 = vmax.f32 %v2138_v32, 0.0 }
 0x2ae   :  { %2168 = vst [vmem:[%s3408_s4 + $0x58] sm:$0xf] %v2156_v61  ;;  %v1881_v54 = vpop.f32.mrf.mxu2  ;;  %v1904_v60 = vpop.f32.mrf.mxu3 }
 0x2af   :  { %2162 = vst [vmem:[%s3408_s4 + $0x28] sm:$0xff] %v2150_v46  ;;  %v1994_v26 = vadd.f32 %v1881_v54, %v3289_v36  ;;  %v1983_v34 = vadd.f32 %v1904_v60, %v3292_v41 }
 0x2b1   :  { %v2048_v49 = vrot.slane %v1994_v26, 4  ;;  %v2050_v58 = vrot.slane %v1983_v34, 4 }
 0x2b3   :  { %v2049_v51 = vsel %vm2022_vm2, %v2047_v23, %v2048_v49  ;;  %v2103_v62 = vmax.f32 %v1982_v30, %v2048_v49 }
 0x2b4   :  { %v2091_v22 = vmax.f32 %v1970_v43, %v2049_v51 }
 0x2b5   :  { %v2115_v10 = vmax.f32 %v3446_v0, %v2103_v62 }
 0x2b6   :  { %v2109_v48 = vmax.f32 %v3449_v25, %v2091_v22  ;;  %v1907_v56 = vpop.f32.mrf.mxu3 }
 0x2b7   :  { %v2141_v36 = vadd.f32 %v2123_v59, %v2115_v10  ;;  %v1995_v14 = vadd.f32 %v1907_v56, %v3299_v5 }
 0x2b8   :  { %v2135_v33 = vadd.f32 %v2123_v59, %v2109_v48 }
 0x2b9   :  { %v2153_v7 = vmax.f32 %v2141_v36, 0.0  ;;  %v2051_v44 = vrot.slane %v1995_v14, 4 }
 0x2ba   :  { %v2147_v21 = vmax.f32 %v2135_v33, 0.0 }
 0x2bb   :  { %2165 = vst [vmem:[%s3408_s4 + $0x40] sm:$0xf] %v2153_v7  ;;  %v2052_v41 = vsel %vm2022_vm2, %v2050_v58, %v2051_v44  ;;  %v2104_v9 = vmax.f32 %v1983_v34, %v2051_v44 }
 0x2bc   :  { %2159 = vst [vmem:[%s3408_s4 + $0x10] sm:$0xff] %v2147_v21  ;;  %v2092_v5 = vmax.f32 %v1971_v3, %v2052_v41 }
 0x2bd   :  { %v2116_v16 = vmax.f32 %v3305_v53, %v2104_v9 }
 0x2be   :  { %v2110_v57 = vmax.f32 %v2086_v39, %v2092_v5 }
 0x2bf   :  { %v2142_v6 = vadd.f32 %v2124_v55, %v2116_v16 }
 0x2c0   :  { %v2136_v52 = vadd.f32 %v2124_v55, %v2110_v57 }
 0x2c1   :  { %v2154_v24 = vmax.f32 %v2142_v6, 0.0 }
 0x2c2   :  { %v2148_v37 = vmax.f32 %v2136_v52, 0.0 }
 0x2c3   :  { %2166 = vst [vmem:[%s3408_s4 + $0x48] sm:$0xf] %v2154_v24 }
 0x2c4   :  { %2160 = vst [vmem:[%s3408_s4 + $0x18] sm:$0xff] %v2148_v37 }
 0x2c5   :  { %2173 = vsyncpa [#allocation3], 1 }

</bundles_post_ra>
